<compile_context>
chip_gen: v5e
topology: v5e:2x2
jax: 0.10.0
libtpu: 0.0.40
codegen_flags: <defaults>
</compile_context>

<pallas_src>
import math
import functools

import jax
import jax.numpy as jnp
from jax import lax
from jax.experimental import pallas as pl
from jax.experimental.pallas import tpu as pltpu


def _mha_kernel(x_ref, wq_ref, wk_ref, wv_ref, wo_ref, bq_ref, bv_ref, bo_ref,
                o_ref, k_scr, v_scr, q_scr, ao_scr,
                *, num_heads: int, head_dim: int, q_tile: int, compute_dtype):
    H, hd, TQ = num_heads, head_dim, q_tile
    cdt = compute_dtype
    f32 = jnp.float32
    qi = pl.program_id(1)

    # ---- K/V projection: only at qi == 0; results persist in VMEM scratch
    # across the sequential qi axis (scratch lives for the whole grid).
    # bk is dropped: constant across the key axis, it cancels in the softmax.
    @pl.when(qi == 0)
    def _project_kv():
        xkv = x_ref[0]                                              # (S, D) bf16
        k = jnp.dot(xkv, wk_ref[...], preferred_element_type=f32)
        v = jnp.dot(xkv, wv_ref[...], preferred_element_type=f32) + bv_ref[...]
        kc = k.astype(cdt)
        vc = v.astype(cdt)
        # Head-split relayout (static lane slices) into (H, S, hd) scratch so
        # the attention matmuls below run as single head-batched dot_generals.
        for h in range(H):
            lo = h * hd
            k_scr[h] = kc[:, lo:lo + hd]
            v_scr[h] = vc[:, lo:lo + hd]

    # ---- Q projection for this row tile.  Q rows are sliced from the resident
    # (S, D) x block (no separate xq input/DMA).  1/sqrt(hd) is folded into
    # wq/bq in the wrapper, so no per-step scale here.
    row0 = pl.multiple_of(qi * TQ, TQ)
    xq = x_ref[0, pl.ds(row0, TQ), :]                               # (TQ, D)
    q = jnp.dot(xq, wq_ref[...], preferred_element_type=f32) + bq_ref[...]
    qc = q.astype(cdt)
    for h in range(H):
        lo = h * hd
        q_scr[h] = qc[:, lo:lo + hd]                                # (TQ, hd)

    # ---- Head-batched attention (H is the dot_general batch dim).
    # scores[h] = q_h @ k_h^T : contract last axes of both -> no transpose op.
    s = lax.dot_general(q_scr[...], k_scr[...],
                        (((2,), (2,)), ((0,), (0,))),
                        preferred_element_type=f32)                 # (H, TQ, S)
    # Numerically stable softmax kept in f32 (v5e has no bf16 VPU/EUP).
    s = s - jnp.max(s, axis=-1, keepdims=True)
    p = jnp.exp(s)
    denom = jnp.sum(p, axis=-1, keepdims=True)                      # (H, TQ, 1)

    # out[h] = p_h @ v_h with unnormalized probs; normalize the small
    # (H, TQ, hd) result with the EUP reciprocal (cheaper than dividing p).
    o3 = lax.dot_general(p.astype(cdt), v_scr[...],
                         (((2,), (1,)), ((0,), (0,))),
                         preferred_element_type=f32)                # (H, TQ, hd)
    o3 = o3 * pl.reciprocal(denom, approx=True)
    o3c = o3.astype(cdt)

    # Repack heads into a lane-dense (TQ, D) slab for the output projection.
    for h in range(H):
        lo = h * hd
        ao_scr[:, lo:lo + hd] = o3c[h]

    out = jnp.dot(ao_scr[...], wo_ref[...], preferred_element_type=f32) + bo_ref[...]
    o_ref[0] = out.astype(o_ref.dtype)


def _mha_pallas_call(xc, wqc, wkc, wvc, woc, bqf, bvf, bof, *,
                     num_heads, head_dim, q_tile, compute_dtype, out_dtype,
                     single_buffer_weights):
    B, S, D = xc.shape
    TQ = q_tile
    NQ = S // TQ
    H, hd = num_heads, head_dim
    cdt = compute_dtype

    kernel = functools.partial(_mha_kernel, num_heads=H, head_dim=hd,
                               q_tile=TQ, compute_dtype=cdt)

    if single_buffer_weights:
        # Constant index maps -> nothing to prefetch; single-buffer the
        # resident weights/biases to halve their VMEM footprint.
        w_spec = pl.BlockSpec((D, D), lambda b, qi: (0, 0),
                              pipeline_mode=pl.Buffered(1))
        b_spec = pl.BlockSpec((1, D), lambda b, qi: (0, 0),
                              pipeline_mode=pl.Buffered(1))
        n_wbuf = 1
    else:
        w_spec = pl.BlockSpec((D, D), lambda b, qi: (0, 0))
        b_spec = pl.BlockSpec((1, D), lambda b, qi: (0, 0))
        n_wbuf = 2

    # ---- Generation-aware VMEM budget (v7x only has 64 MiB per core).
    cb = cdt.itemsize
    ob = jnp.dtype(out_dtype).itemsize
    vmem_need = (
        n_wbuf * 4 * D * D * cb            # wq wk wv wo blocks
        + n_wbuf * 3 * D * 4               # bq bv bo blocks (f32)
        + 2 * S * D * cb                   # double-buffered (1,S,D) x block
        + 2 * TQ * D * ob                  # double-buffered (1,TQ,D) out block
        + 2 * S * D * cb                   # k_scr + v_scr (cached K/V)
        + (H * TQ * hd + TQ * D) * cb      # q_scr + ao_scr
        + 2 * H * TQ * S * 4               # f32 score + exp temporaries
        + H * TQ * S * cb                  # bf16 prob copy feeding PV matmul
        + 4 * TQ * D * 4                   # misc f32 projection temporaries
    )
    try:
        vmem_cap = int(pltpu.get_tpu_info().vmem_capacity_bytes)
    except Exception:
        vmem_cap = 64 * 1024 * 1024        # conservative: v7x per-core VMEM
    headroom = 8 * 1024 * 1024
    vmem_limit = int(min(vmem_cap - headroom,
                         max(32 * 1024 * 1024, int(1.25 * vmem_need))))

    return pl.pallas_call(
        kernel,
        out_shape=jax.ShapeDtypeStruct((B, S, D), out_dtype),
        grid_spec=pltpu.PrefetchScalarGridSpec(
            num_scalar_prefetch=0,
            grid=(B, NQ),
            in_specs=[
                pl.BlockSpec((1, S, D), lambda b, qi: (b, 0, 0)),   # x (all rows)
                w_spec, w_spec, w_spec, w_spec,                     # wq wk wv wo
                b_spec, b_spec, b_spec,                             # bq bv bo
            ],
            out_specs=pl.BlockSpec((1, TQ, D), lambda b, qi: (b, qi, 0)),
            scratch_shapes=[
                pltpu.VMEM((H, S, hd), cdt),    # K cache (persists across qi)
                pltpu.VMEM((H, S, hd), cdt),    # V cache (persists across qi)
                pltpu.VMEM((H, TQ, hd), cdt),   # head-batched Q for this tile
                pltpu.VMEM((TQ, D), cdt),       # attention-output slab
            ],
        ),
        compiler_params=pltpu.CompilerParams(
            # batch: megacore-parallel; qi must be sequential ("arbitrary") so
            # the K/V scratch computed at qi == 0 is valid for qi > 0.
            # TODO(synk): if B == 1 on v7x, make heads the parallel axis.
            dimension_semantics=("parallel", "arbitrary"),
            vmem_limit_bytes=vmem_limit),
    )(xc, wqc, wkc, wvc, woc, bqf, bvf, bof)


def multi_head_attention(x, wq, wk, wv, wo, bq, bk, bv, bo, *,
                         num_heads: int, q_tile: int = 128,
                         compute_dtype=jnp.bfloat16):
    del bk  # constant across the key axis -> cancels exactly in softmax
    B, S, D = x.shape
    assert D % num_heads == 0, "d_model must be divisible by num_heads"
    head_dim = D // num_heads

    # TQ default 128; sweep up to 256-512 on v5e/v6e (128 MiB VMEM), keep
    # 128-256 on v7x (64 MiB VMEM + cached full-S K/V).
    TQ = min(q_tile, S)
    assert S % TQ == 0, "seq_len must be divisible by the Q tile size"

    cdt = jnp.dtype(compute_dtype)
    f32 = jnp.float32
    inv_scale = 1.0 / math.sqrt(head_dim)

    # Cast MXU operands once in the wrapper; fold 1/sqrt(hd) into wq/bq
    # (exact, removes the per-step (TQ, D) VPU scale).  Biases stay f32 for
    # the f32 accumulator adds.
    # TODO(synk): on v5e/v6e (VMEM-rich) x could be DMA'd as f32 and cast
    # per-tile in-kernel to save one HBM pass; on v7x the bf16 staging halves
    # the (S, D) x-block VMEM footprint, so we keep it.
    xc = x.astype(cdt)
    wqc = (wq.astype(f32) * inv_scale).astype(cdt)
    wkc, wvc, woc = (w.astype(cdt) for w in (wk, wv, wo))
    bqf = bq.astype(f32) * inv_scale
    bvf = bv.astype(f32)
    bof = bo.astype(f32)

    kwargs = dict(num_heads=num_heads, head_dim=head_dim, q_tile=TQ,
                  compute_dtype=cdt, out_dtype=x.dtype)
    try:
        return _mha_pallas_call(xc, wqc, wkc, wvc, woc, bqf, bvf, bof,
                                single_buffer_weights=True, **kwargs)
    except Exception:
        # Fallback if this jax/libtpu build rejects pl.Buffered(1) specs.
        return _mha_pallas_call(xc, wqc, wkc, wvc, woc, bqf, bvf, bof,
                                single_buffer_weights=False, **kwargs)


def _reference(x, wq, wk, wv, wo, bq, bk, bv, bo, num_heads):
    """Pure-JAX f32 reference mirroring the PyTorch forward (mask=None)."""
    B, S, D = x.shape
    hd = D // num_heads
    q = x @ wq + bq[0]
    k = x @ wk + bk[0]
    v = x @ wv + bv[0]
    q = q.reshape(B, S, num_heads, hd).transpose(0, 2, 1, 3)
    k = k.reshape(B, S, num_heads, hd).transpose(0, 2, 1, 3)
    v = v.reshape(B, S, num_heads, hd).transpose(0, 2, 1, 3)
    scores = jnp.einsum("bhqd,bhkd->bhqk", q, k) / math.sqrt(hd)
    attn = jax.nn.softmax(scores, axis=-1)
    out = jnp.einsum("bhqk,bhkd->bhqd", attn, v)
    out = out.transpose(0, 2, 1, 3).reshape(B, S, D)
    return out @ wo + bo[0]


if __name__ == "__main__":
    # Small shapes: batch=2, seq=8, d_model=32, heads=4 (head_dim=8)
    B, S, D, H = 2, 8, 32, 4

    key = jax.random.PRNGKey(0)
    kx, kq, kk, kv, ko, kbq, kbk, kbv, kbo = jax.random.split(key, 9)

    x = jax.random.normal(kx, (B, S, D), dtype=jnp.float32)

    def init_w(k):
        return jax.random.normal(k, (D, D), dtype=jnp.float32) * 0.05

    def init_b(k):
        return jax.random.normal(k, (1, D), dtype=jnp.float32) * 0.05

    wq, wk, wv, wo = init_w(kq), init_w(kk), init_w(kv), init_w(ko)
    bq, bk, bv, bo = init_b(kbq), init_b(kbk), init_b(kbv), init_b(kbo)

    out = multi_head_attention(x, wq, wk, wv, wo, bq, bk, bv, bo, num_heads=H)
    out = jax.block_until_ready(out)

    ref = _reference(x, wq, wk, wv, wo, bq, bk, bv, bo, H)
    assert out.shape == (B, S, D)
    # bf16 MXU operands + approx reciprocal -> compare against the f32
    # reference with a correspondingly looser tolerance.
    assert jnp.allclose(out, ref, atol=2e-2, rtol=2e-2), "mismatch vs reference"

    print("KERNEL_OK")
</pallas_src>

<mosaic_0001>
module attributes {stable_mosaic.version = 11 : i64} {
  func.func @_mha_kernel(%arg0: i32, %arg1: i32, %arg2: memref<1x8x32xbf16, #tpu.memory_space<vmem>>, %arg3: memref<32x32xbf16, #tpu.memory_space<vmem>>, %arg4: memref<32x32xbf16, #tpu.memory_space<vmem>>, %arg5: memref<32x32xbf16, #tpu.memory_space<vmem>>, %arg6: memref<32x32xbf16, #tpu.memory_space<vmem>>, %arg7: memref<1x32xf32, #tpu.memory_space<vmem>>, %arg8: memref<1x32xf32, #tpu.memory_space<vmem>>, %arg9: memref<1x32xf32, #tpu.memory_space<vmem>>, %arg10: memref<1x8x32xf32, #tpu.memory_space<vmem>>, %arg11: memref<4x8x8xbf16, #tpu.memory_space<vmem>>, %arg12: memref<4x8x8xbf16, #tpu.memory_space<vmem>>, %arg13: memref<4x8x8xbf16, #tpu.memory_space<vmem>>, %arg14: memref<8x32xbf16, #tpu.memory_space<vmem>>) attributes {dimension_semantics = [#tpu.dimension_semantics<parallel>, #tpu.dimension_semantics<arbitrary>], iteration_bounds = array<i64: 2, 1>, scalar_prefetch = 0 : i64, scratch_operands = 4 : i64, tpu.core_type = #tpu.core_type<tc>, window_params = [{transform_indices = @transform_0, window_bounds = array<i64: 1, 8, 32>}, {pipeline_mode = #tpu.pipeline_mode<synchronous>, transform_indices = @transform_1, window_bounds = array<i64: 32, 32>}, {pipeline_mode = #tpu.pipeline_mode<synchronous>, transform_indices = @transform_2, window_bounds = array<i64: 32, 32>}, {pipeline_mode = #tpu.pipeline_mode<synchronous>, transform_indices = @transform_3, window_bounds = array<i64: 32, 32>}, {pipeline_mode = #tpu.pipeline_mode<synchronous>, transform_indices = @transform_4, window_bounds = array<i64: 32, 32>}, {pipeline_mode = #tpu.pipeline_mode<synchronous>, transform_indices = @transform_5, window_bounds = array<i64: 1, 32>}, {pipeline_mode = #tpu.pipeline_mode<synchronous>, transform_indices = @transform_6, window_bounds = array<i64: 1, 32>}, {pipeline_mode = #tpu.pipeline_mode<synchronous>, transform_indices = @transform_7, window_bounds = array<i64: 1, 32>}, {transform_indices = @transform_8, window_bounds = array<i64: 1, 8, 32>}]} {
    %c0_i32 = arith.constant 0 : i32
    %0 = arith.cmpi eq, %arg1, %c0_i32 : i32
    %1 = arith.extui %0 : i1 to i32
    %c0_i32_0 = arith.constant 0 : i32
    %2 = arith.cmpi ne, %1, %c0_i32_0 : i32
    scf.if %2 {
      %c0_43 = arith.constant 0 : index
      %c0_44 = arith.constant 0 : index
      %c0_45 = arith.constant 0 : index
      %68 = vector.load %arg2[%c0_43, %c0_44, %c0_45] : memref<1x8x32xbf16, #tpu.memory_space<vmem>>, vector<1x8x32xbf16>
      %69 = vector.shape_cast %68 : vector<1x8x32xbf16> to vector<8x32xbf16>
      %c0_46 = arith.constant 0 : index
      %c0_47 = arith.constant 0 : index
      %70 = vector.load %arg4[%c0_46, %c0_47] : memref<32x32xbf16, #tpu.memory_space<vmem>>, vector<32x32xbf16>
      %cst_48 = arith.constant dense<0.000000e+00> : vector<8x32xf32>
      %71 = tpu.matmul %69, %70, %cst_48 {dimension_numbers = #tpu.dot_dimension_numbers<[1], [0], [0], [1], [0, 0, 1, 1], [], []>} : vector<8x32xbf16>, vector<32x32xbf16>, vector<8x32xf32> -> vector<8x32xf32>
      %c0_49 = arith.constant 0 : index
      %c0_50 = arith.constant 0 : index
      %72 = vector.load %arg5[%c0_49, %c0_50] : memref<32x32xbf16, #tpu.memory_space<vmem>>, vector<32x32xbf16>
      %cst_51 = arith.constant dense<0.000000e+00> : vector<8x32xf32>
      %73 = tpu.matmul %69, %72, %cst_51 {dimension_numbers = #tpu.dot_dimension_numbers<[1], [0], [0], [1], [0, 0, 1, 1], [], []>} : vector<8x32xbf16>, vector<32x32xbf16>, vector<8x32xf32> -> vector<8x32xf32>
      %c0_52 = arith.constant 0 : index
      %c0_53 = arith.constant 0 : index
      %74 = vector.load %arg8[%c0_52, %c0_53] : memref<1x32xf32, #tpu.memory_space<vmem>>, vector<1x32xf32>
      %75 = vector.broadcast %74 : vector<1x32xf32> to vector<8x32xf32>
      %76 = arith.addf %73, %75 : vector<8x32xf32>
      %77 = arith.truncf %71 : vector<8x32xf32> to vector<8x32xbf16>
      %78 = arith.truncf %76 : vector<8x32xf32> to vector<8x32xbf16>
      %79 = vector.extract_strided_slice %77 {offsets = [0, 0], sizes = [8, 8], strides = [1, 1]} : vector<8x32xbf16> to vector<8x8xbf16>
      %c0_54 = arith.constant 0 : index
      %c0_55 = arith.constant 0 : index
      %c0_56 = arith.constant 0 : index
      %80 = vector.load %arg11[%c0_54, %c0_55, %c0_56] : memref<4x8x8xbf16, #tpu.memory_space<vmem>>, vector<1x8x8xbf16>
      %81 = vector.shape_cast %80 : vector<1x8x8xbf16> to vector<8x8xbf16>
      %82 = vector.shape_cast %79 : vector<8x8xbf16> to vector<1x8x8xbf16>
      tpu.vector_store %arg11[%c0_54, %c0_55, %c0_56], %82 {strides = array<i32>} : memref<4x8x8xbf16, #tpu.memory_space<vmem>>, vector<1x8x8xbf16>,
      %83 = vector.extract_strided_slice %78 {offsets = [0, 0], sizes = [8, 8], strides = [1, 1]} : vector<8x32xbf16> to vector<8x8xbf16>
      %c0_57 = arith.constant 0 : index
      %c0_58 = arith.constant 0 : index
      %c0_59 = arith.constant 0 : index
      %84 = vector.load %arg12[%c0_57, %c0_58, %c0_59] : memref<4x8x8xbf16, #tpu.memory_space<vmem>>, vector<1x8x8xbf16>
      %85 = vector.shape_cast %84 : vector<1x8x8xbf16> to vector<8x8xbf16>
      %86 = vector.shape_cast %83 : vector<8x8xbf16> to vector<1x8x8xbf16>
      tpu.vector_store %arg12[%c0_57, %c0_58, %c0_59], %86 {strides = array<i32>} : memref<4x8x8xbf16, #tpu.memory_space<vmem>>, vector<1x8x8xbf16>,
      %87 = vector.extract_strided_slice %77 {offsets = [0, 8], sizes = [8, 8], strides = [1, 1]} : vector<8x32xbf16> to vector<8x8xbf16>
      %c1_60 = arith.constant 1 : index
      %c0_61 = arith.constant 0 : index
      %c0_62 = arith.constant 0 : index
      %88 = vector.load %arg11[%c1_60, %c0_61, %c0_62] : memref<4x8x8xbf16, #tpu.memory_space<vmem>>, vector<1x8x8xbf16>
      %89 = vector.shape_cast %88 : vector<1x8x8xbf16> to vector<8x8xbf16>
      %90 = vector.shape_cast %87 : vector<8x8xbf16> to vector<1x8x8xbf16>
      tpu.vector_store %arg11[%c1_60, %c0_61, %c0_62], %90 {strides = array<i32>} : memref<4x8x8xbf16, #tpu.memory_space<vmem>>, vector<1x8x8xbf16>,
      %91 = vector.extract_strided_slice %78 {offsets = [0, 8], sizes = [8, 8], strides = [1, 1]} : vector<8x32xbf16> to vector<8x8xbf16>
      %c1_63 = arith.constant 1 : index
      %c0_64 = arith.constant 0 : index
      %c0_65 = arith.constant 0 : index
      %92 = vector.load %arg12[%c1_63, %c0_64, %c0_65] : memref<4x8x8xbf16, #tpu.memory_space<vmem>>, vector<1x8x8xbf16>
      %93 = vector.shape_cast %92 : vector<1x8x8xbf16> to vector<8x8xbf16>
      %94 = vector.shape_cast %91 : vector<8x8xbf16> to vector<1x8x8xbf16>
      tpu.vector_store %arg12[%c1_63, %c0_64, %c0_65], %94 {strides = array<i32>} : memref<4x8x8xbf16, #tpu.memory_space<vmem>>, vector<1x8x8xbf16>,
      %95 = vector.extract_strided_slice %77 {offsets = [0, 16], sizes = [8, 8], strides = [1, 1]} : vector<8x32xbf16> to vector<8x8xbf16>
      %c2_66 = arith.constant 2 : index
      %c0_67 = arith.constant 0 : index
      %c0_68 = arith.constant 0 : index
      %96 = vector.load %arg11[%c2_66, %c0_67, %c0_68] : memref<4x8x8xbf16, #tpu.memory_space<vmem>>, vector<1x8x8xbf16>
      %97 = vector.shape_cast %96 : vector<1x8x8xbf16> to vector<8x8xbf16>
      %98 = vector.shape_cast %95 : vector<8x8xbf16> to vector<1x8x8xbf16>
      tpu.vector_store %arg11[%c2_66, %c0_67, %c0_68], %98 {strides = array<i32>} : memref<4x8x8xbf16, #tpu.memory_space<vmem>>, vector<1x8x8xbf16>,
      %99 = vector.extract_strided_slice %78 {offsets = [0, 16], sizes = [8, 8], strides = [1, 1]} : vector<8x32xbf16> to vector<8x8xbf16>
      %c2_69 = arith.constant 2 : index
      %c0_70 = arith.constant 0 : index
      %c0_71 = arith.constant 0 : index
      %100 = vector.load %arg12[%c2_69, %c0_70, %c0_71] : memref<4x8x8xbf16, #tpu.memory_space<vmem>>, vector<1x8x8xbf16>
      %101 = vector.shape_cast %100 : vector<1x8x8xbf16> to vector<8x8xbf16>
      %102 = vector.shape_cast %99 : vector<8x8xbf16> to vector<1x8x8xbf16>
      tpu.vector_store %arg12[%c2_69, %c0_70, %c0_71], %102 {strides = array<i32>} : memref<4x8x8xbf16, #tpu.memory_space<vmem>>, vector<1x8x8xbf16>,
      %103 = vector.extract_strided_slice %77 {offsets = [0, 24], sizes = [8, 8], strides = [1, 1]} : vector<8x32xbf16> to vector<8x8xbf16>
      %c3_72 = arith.constant 3 : index
      %c0_73 = arith.constant 0 : index
      %c0_74 = arith.constant 0 : index
      %104 = vector.load %arg11[%c3_72, %c0_73, %c0_74] : memref<4x8x8xbf16, #tpu.memory_space<vmem>>, vector<1x8x8xbf16>
      %105 = vector.shape_cast %104 : vector<1x8x8xbf16> to vector<8x8xbf16>
      %106 = vector.shape_cast %103 : vector<8x8xbf16> to vector<1x8x8xbf16>
      tpu.vector_store %arg11[%c3_72, %c0_73, %c0_74], %106 {strides = array<i32>} : memref<4x8x8xbf16, #tpu.memory_space<vmem>>, vector<1x8x8xbf16>,
      %107 = vector.extract_strided_slice %78 {offsets = [0, 24], sizes = [8, 8], strides = [1, 1]} : vector<8x32xbf16> to vector<8x8xbf16>
      %c3_75 = arith.constant 3 : index
      %c0_76 = arith.constant 0 : index
      %c0_77 = arith.constant 0 : index
      %108 = vector.load %arg12[%c3_75, %c0_76, %c0_77] : memref<4x8x8xbf16, #tpu.memory_space<vmem>>, vector<1x8x8xbf16>
      %109 = vector.shape_cast %108 : vector<1x8x8xbf16> to vector<8x8xbf16>
      %110 = vector.shape_cast %107 : vector<8x8xbf16> to vector<1x8x8xbf16>
      tpu.vector_store %arg12[%c3_75, %c0_76, %c0_77], %110 {strides = array<i32>} : memref<4x8x8xbf16, #tpu.memory_space<vmem>>, vector<1x8x8xbf16>,
    } else {
    }
    %c8_i32 = arith.constant 8 : i32
    %3 = arith.muli %arg1, %c8_i32 : i32
    %4 = tpu.assume_multiple %3, 8 : i32
    %c0 = arith.constant 0 : index
    %5 = arith.index_cast %4 : i32 to index
    %c0_1 = arith.constant 0 : index
    %6 = vector.load %arg2[%c0, %5, %c0_1] : memref<1x8x32xbf16, #tpu.memory_space<vmem>>, vector<1x8x32xbf16>
    %7 = vector.shape_cast %6 : vector<1x8x32xbf16> to vector<8x32xbf16>
    %c0_2 = arith.constant 0 : index
    %c0_3 = arith.constant 0 : index
    %8 = vector.load %arg3[%c0_2, %c0_3] : memref<32x32xbf16, #tpu.memory_space<vmem>>, vector<32x32xbf16>
    %cst = arith.constant dense<0.000000e+00> : vector<8x32xf32>
    %9 = tpu.matmul %7, %8, %cst {dimension_numbers = #tpu.dot_dimension_numbers<[1], [0], [0], [1], [0, 0, 1, 1], [], []>} : vector<8x32xbf16>, vector<32x32xbf16>, vector<8x32xf32> -> vector<8x32xf32>
    %c0_4 = arith.constant 0 : index
    %c0_5 = arith.constant 0 : index
    %10 = vector.load %arg7[%c0_4, %c0_5] : memref<1x32xf32, #tpu.memory_space<vmem>>, vector<1x32xf32>
    %11 = vector.broadcast %10 : vector<1x32xf32> to vector<8x32xf32>
    %12 = arith.addf %9, %11 : vector<8x32xf32>
    %13 = arith.truncf %12 : vector<8x32xf32> to vector<8x32xbf16>
    %14 = vector.extract_strided_slice %13 {offsets = [0, 0], sizes = [8, 8], strides = [1, 1]} : vector<8x32xbf16> to vector<8x8xbf16>
    %c0_6 = arith.constant 0 : index
    %c0_7 = arith.constant 0 : index
    %c0_8 = arith.constant 0 : index
    %15 = vector.load %arg13[%c0_6, %c0_7, %c0_8] : memref<4x8x8xbf16, #tpu.memory_space<vmem>>, vector<1x8x8xbf16>
    %16 = vector.shape_cast %15 : vector<1x8x8xbf16> to vector<8x8xbf16>
    %17 = vector.shape_cast %14 : vector<8x8xbf16> to vector<1x8x8xbf16>
    tpu.vector_store %arg13[%c0_6, %c0_7, %c0_8], %17 {strides = array<i32>} : memref<4x8x8xbf16, #tpu.memory_space<vmem>>, vector<1x8x8xbf16>,
    %18 = vector.extract_strided_slice %13 {offsets = [0, 8], sizes = [8, 8], strides = [1, 1]} : vector<8x32xbf16> to vector<8x8xbf16>
    %c1 = arith.constant 1 : index
    %c0_9 = arith.constant 0 : index
    %c0_10 = arith.constant 0 : index
    %19 = vector.load %arg13[%c1, %c0_9, %c0_10] : memref<4x8x8xbf16, #tpu.memory_space<vmem>>, vector<1x8x8xbf16>
    %20 = vector.shape_cast %19 : vector<1x8x8xbf16> to vector<8x8xbf16>
    %21 = vector.shape_cast %18 : vector<8x8xbf16> to vector<1x8x8xbf16>
    tpu.vector_store %arg13[%c1, %c0_9, %c0_10], %21 {strides = array<i32>} : memref<4x8x8xbf16, #tpu.memory_space<vmem>>, vector<1x8x8xbf16>,
    %22 = vector.extract_strided_slice %13 {offsets = [0, 16], sizes = [8, 8], strides = [1, 1]} : vector<8x32xbf16> to vector<8x8xbf16>
    %c2 = arith.constant 2 : index
    %c0_11 = arith.constant 0 : index
    %c0_12 = arith.constant 0 : index
    %23 = vector.load %arg13[%c2, %c0_11, %c0_12] : memref<4x8x8xbf16, #tpu.memory_space<vmem>>, vector<1x8x8xbf16>
    %24 = vector.shape_cast %23 : vector<1x8x8xbf16> to vector<8x8xbf16>
    %25 = vector.shape_cast %22 : vector<8x8xbf16> to vector<1x8x8xbf16>
    tpu.vector_store %arg13[%c2, %c0_11, %c0_12], %25 {strides = array<i32>} : memref<4x8x8xbf16, #tpu.memory_space<vmem>>, vector<1x8x8xbf16>,
    %26 = vector.extract_strided_slice %13 {offsets = [0, 24], sizes = [8, 8], strides = [1, 1]} : vector<8x32xbf16> to vector<8x8xbf16>
    %c3 = arith.constant 3 : index
    %c0_13 = arith.constant 0 : index
    %c0_14 = arith.constant 0 : index
    %27 = vector.load %arg13[%c3, %c0_13, %c0_14] : memref<4x8x8xbf16, #tpu.memory_space<vmem>>, vector<1x8x8xbf16>
    %28 = vector.shape_cast %27 : vector<1x8x8xbf16> to vector<8x8xbf16>
    %29 = vector.shape_cast %26 : vector<8x8xbf16> to vector<1x8x8xbf16>
    tpu.vector_store %arg13[%c3, %c0_13, %c0_14], %29 {strides = array<i32>} : memref<4x8x8xbf16, #tpu.memory_space<vmem>>, vector<1x8x8xbf16>,
    %c0_15 = arith.constant 0 : index
    %c0_16 = arith.constant 0 : index
    %c0_17 = arith.constant 0 : index
    %30 = vector.load %arg13[%c0_15, %c0_16, %c0_17] : memref<4x8x8xbf16, #tpu.memory_space<vmem>>, vector<4x8x8xbf16>
    %c0_18 = arith.constant 0 : index
    %c0_19 = arith.constant 0 : index
    %c0_20 = arith.constant 0 : index
    %31 = vector.load %arg11[%c0_18, %c0_19, %c0_20] : memref<4x8x8xbf16, #tpu.memory_space<vmem>>, vector<4x8x8xbf16>
    %cst_21 = arith.constant dense<0.000000e+00> : vector<4x8x8xf32>
    %32 = tpu.matmul %30, %31, %cst_21 {dimension_numbers = #tpu.dot_dimension_numbers<[2], [2], [1], [1], [0, 0, 0, 1, 1, 1], [0], [0]>} : vector<4x8x8xbf16>, vector<4x8x8xbf16>, vector<4x8x8xf32> -> vector<4x8x8xf32>
    %cst_22 = arith.constant dense<0xFF800000> : vector<4x8xf32>
    %33 = vector.multi_reduction <maximumf>, %32, %cst_22 [2] : vector<4x8x8xf32> to vector<4x8xf32>
    %34 = vector.shape_cast %33 : vector<4x8xf32> to vector<4x8x1xf32>
    %35 = vector.broadcast %34 : vector<4x8x1xf32> to vector<4x8x8xf32>
    %36 = arith.subf %32, %35 : vector<4x8x8xf32>
    %37 = math.exp %36 : vector<4x8x8xf32>
    %cst_23 = arith.constant dense<0.000000e+00> : vector<4x8xf32>
    %38 = vector.multi_reduction <add>, %37, %cst_23 [2] : vector<4x8x8xf32> to vector<4x8xf32>
    %39 = vector.shape_cast %38 : vector<4x8xf32> to vector<4x8x1xf32>
    %40 = arith.truncf %37 : vector<4x8x8xf32> to vector<4x8x8xbf16>
    %c0_24 = arith.constant 0 : index
    %c0_25 = arith.constant 0 : index
    %c0_26 = arith.constant 0 : index
    %41 = vector.load %arg12[%c0_24, %c0_25, %c0_26] : memref<4x8x8xbf16, #tpu.memory_space<vmem>>, vector<4x8x8xbf16>
    %cst_27 = arith.constant dense<0.000000e+00> : vector<4x8x8xf32>
    %42 = tpu.matmul %40, %41, %cst_27 {dimension_numbers = #tpu.dot_dimension_numbers<[2], [1], [1], [2], [0, 0, 0, 1, 1, 2], [0], [0]>} : vector<4x8x8xbf16>, vector<4x8x8xbf16>, vector<4x8x8xf32> -> vector<4x8x8xf32>
    %43 = tpu.reciprocal %39 {approx = true} : vector<4x8x1xf32> -> vector<4x8x1xf32>
    %44 = vector.broadcast %43 : vector<4x8x1xf32> to vector<4x8x8xf32>
    %45 = arith.mulf %42, %44 : vector<4x8x8xf32>
    %46 = arith.truncf %45 : vector<4x8x8xf32> to vector<4x8x8xbf16>
    %47 = vector.extract_strided_slice %46 {offsets = [0, 0, 0], sizes = [1, 8, 8], strides = [1, 1, 1]} : vector<4x8x8xbf16> to vector<1x8x8xbf16>
    %48 = vector.shape_cast %47 : vector<1x8x8xbf16> to vector<8x8xbf16>
    %c0_28 = arith.constant 0 : index
    %c0_29 = arith.constant 0 : index
    %49 = vector.load %arg14[%c0_28, %c0_29] : memref<8x32xbf16, #tpu.memory_space<vmem>>, vector<8x8xbf16>
    tpu.vector_store %arg14[%c0_28, %c0_29], %48 {strides = array<i32>} : memref<8x32xbf16, #tpu.memory_space<vmem>>, vector<8x8xbf16>,
    %50 = vector.extract_strided_slice %46 {offsets = [1, 0, 0], sizes = [1, 8, 8], strides = [1, 1, 1]} : vector<4x8x8xbf16> to vector<1x8x8xbf16>
    %51 = vector.shape_cast %50 : vector<1x8x8xbf16> to vector<8x8xbf16>
    %c0_30 = arith.constant 0 : index
    %c8 = arith.constant 8 : index
    %52 = vector.load %arg14[%c0_30, %c8] : memref<8x32xbf16, #tpu.memory_space<vmem>>, vector<8x8xbf16>
    tpu.vector_store %arg14[%c0_30, %c8], %51 {strides = array<i32>} : memref<8x32xbf16, #tpu.memory_space<vmem>>, vector<8x8xbf16>,
    %53 = vector.extract_strided_slice %46 {offsets = [2, 0, 0], sizes = [1, 8, 8], strides = [1, 1, 1]} : vector<4x8x8xbf16> to vector<1x8x8xbf16>
    %54 = vector.shape_cast %53 : vector<1x8x8xbf16> to vector<8x8xbf16>
    %c0_31 = arith.constant 0 : index
    %c16 = arith.constant 16 : index
    %55 = vector.load %arg14[%c0_31, %c16] : memref<8x32xbf16, #tpu.memory_space<vmem>>, vector<8x8xbf16>
    tpu.vector_store %arg14[%c0_31, %c16], %54 {strides = array<i32>} : memref<8x32xbf16, #tpu.memory_space<vmem>>, vector<8x8xbf16>,
    %56 = vector.extract_strided_slice %46 {offsets = [3, 0, 0], sizes = [1, 8, 8], strides = [1, 1, 1]} : vector<4x8x8xbf16> to vector<1x8x8xbf16>
    %57 = vector.shape_cast %56 : vector<1x8x8xbf16> to vector<8x8xbf16>
    %c0_32 = arith.constant 0 : index
    %c24 = arith.constant 24 : index
    %58 = vector.load %arg14[%c0_32, %c24] : memref<8x32xbf16, #tpu.memory_space<vmem>>, vector<8x8xbf16>
    tpu.vector_store %arg14[%c0_32, %c24], %57 {strides = array<i32>} : memref<8x32xbf16, #tpu.memory_space<vmem>>, vector<8x8xbf16>,
    %c0_33 = arith.constant 0 : index
    %c0_34 = arith.constant 0 : index
    %59 = vector.load %arg14[%c0_33, %c0_34] : memref<8x32xbf16, #tpu.memory_space<vmem>>, vector<8x32xbf16>
    %c0_35 = arith.constant 0 : index
    %c0_36 = arith.constant 0 : index
    %60 = vector.load %arg6[%c0_35, %c0_36] : memref<32x32xbf16, #tpu.memory_space<vmem>>, vector<32x32xbf16>
    %cst_37 = arith.constant dense<0.000000e+00> : vector<8x32xf32>
    %61 = tpu.matmul %59, %60, %cst_37 {dimension_numbers = #tpu.dot_dimension_numbers<[1], [0], [0], [1], [0, 0, 1, 1], [], []>} : vector<8x32xbf16>, vector<32x32xbf16>, vector<8x32xf32> -> vector<8x32xf32>
    %c0_38 = arith.constant 0 : index
    %c0_39 = arith.constant 0 : index
    %62 = vector.load %arg9[%c0_38, %c0_39] : memref<1x32xf32, #tpu.memory_space<vmem>>, vector<1x32xf32>
    %63 = vector.broadcast %62 : vector<1x32xf32> to vector<8x32xf32>
    %64 = arith.addf %61, %63 : vector<8x32xf32>
    %c0_40 = arith.constant 0 : index
    %c0_41 = arith.constant 0 : index
    %c0_42 = arith.constant 0 : index
    %65 = vector.load %arg10[%c0_40, %c0_41, %c0_42] : memref<1x8x32xf32, #tpu.memory_space<vmem>>, vector<1x8x32xf32>
    %66 = vector.shape_cast %65 : vector<1x8x32xf32> to vector<8x32xf32>
    %67 = vector.shape_cast %64 : vector<8x32xf32> to vector<1x8x32xf32>
    tpu.vector_store %arg10[%c0_40, %c0_41, %c0_42], %67 {strides = array<i32>} : memref<1x8x32xf32, #tpu.memory_space<vmem>>, vector<1x8x32xf32>,
    return
  }
  func.func @transform_0(%arg0: i32, %arg1: i32) -> (i32, i32, i32) {
    %c0_i32 = arith.constant 0 : i32
    %c0_i32_0 = arith.constant 0 : i32
    %c0_i32_1 = arith.constant 0 : i32
    return %arg0, %c0_i32, %c0_i32_0 : i32, i32, i32
  }
  func.func @transform_1(%arg0: i32, %arg1: i32) -> (i32, i32) {
    %c0_i32 = arith.constant 0 : i32
    %c0_i32_0 = arith.constant 0 : i32
    %c0_i32_1 = arith.constant 0 : i32
    return %c0_i32, %c0_i32_0 : i32, i32
  }
  func.func @transform_2(%arg0: i32, %arg1: i32) -> (i32, i32) {
    %c0_i32 = arith.constant 0 : i32
    %c0_i32_0 = arith.constant 0 : i32
    %c0_i32_1 = arith.constant 0 : i32
    return %c0_i32, %c0_i32_0 : i32, i32
  }
  func.func @transform_3(%arg0: i32, %arg1: i32) -> (i32, i32) {
    %c0_i32 = arith.constant 0 : i32
    %c0_i32_0 = arith.constant 0 : i32
    %c0_i32_1 = arith.constant 0 : i32
    return %c0_i32, %c0_i32_0 : i32, i32
  }
  func.func @transform_4(%arg0: i32, %arg1: i32) -> (i32, i32) {
    %c0_i32 = arith.constant 0 : i32
    %c0_i32_0 = arith.constant 0 : i32
    %c0_i32_1 = arith.constant 0 : i32
    return %c0_i32, %c0_i32_0 : i32, i32
  }
  func.func @transform_5(%arg0: i32, %arg1: i32) -> (i32, i32) {
    %c0_i32 = arith.constant 0 : i32
    %c0_i32_0 = arith.constant 0 : i32
    %c0_i32_1 = arith.constant 0 : i32
    return %c0_i32, %c0_i32_0 : i32, i32
  }
  func.func @transform_6(%arg0: i32, %arg1: i32) -> (i32, i32) {
    %c0_i32 = arith.constant 0 : i32
    %c0_i32_0 = arith.constant 0 : i32
    %c0_i32_1 = arith.constant 0 : i32
    return %c0_i32, %c0_i32_0 : i32, i32
  }
  func.func @transform_7(%arg0: i32, %arg1: i32) -> (i32, i32) {
    %c0_i32 = arith.constant 0 : i32
    %c0_i32_0 = arith.constant 0 : i32
    %c0_i32_1 = arith.constant 0 : i32
    return %c0_i32, %c0_i32_0 : i32, i32
  }
  func.func @transform_8(%arg0: i32, %arg1: i32) -> (i32, i32, i32) {
    %c0_i32 = arith.constant 0 : i32
    %c0_i32_0 = arith.constant 0 : i32
    return %arg0, %arg1, %c0_i32 : i32, i32, i32
  }
}

module attributes {stable_mosaic.version = 11 : i64} {
  func.func @_mha_kernel(%arg0: i32, %arg1: i32, %arg2: memref<1x8x32xbf16, #tpu.memory_space<vmem>>, %arg3: memref<32x32xbf16, #tpu.memory_space<vmem>>, %arg4: memref<32x32xbf16, #tpu.memory_space<vmem>>, %arg5: memref<32x32xbf16, #tpu.memory_space<vmem>>, %arg6: memref<32x32xbf16, #tpu.memory_space<vmem>>, %arg7: memref<1x32xf32, #tpu.memory_space<vmem>>, %arg8: memref<1x32xf32, #tpu.memory_space<vmem>>, %arg9: memref<1x32xf32, #tpu.memory_space<vmem>>, %arg10: memref<1x8x32xf32, #tpu.memory_space<vmem>>, %arg11: memref<4x8x8xbf16, #tpu.memory_space<vmem>>, %arg12: memref<4x8x8xbf16, #tpu.memory_space<vmem>>, %arg13: memref<4x8x8xbf16, #tpu.memory_space<vmem>>, %arg14: memref<8x32xbf16, #tpu.memory_space<vmem>>) attributes {dimension_semantics = [#tpu.dimension_semantics<parallel>, #tpu.dimension_semantics<arbitrary>], iteration_bounds = array<i64: 2, 1>, scalar_prefetch = 0 : i64, scratch_operands = 4 : i64, tpu.core_type = #tpu.core_type<tc>, window_params = [{transform_indices = @transform_0, window_bounds = array<i64: 1, 8, 32>}, {pipeline_mode = #tpu.pipeline_mode<synchronous>, transform_indices = @transform_1, window_bounds = array<i64: 32, 32>}, {pipeline_mode = #tpu.pipeline_mode<synchronous>, transform_indices = @transform_2, window_bounds = array<i64: 32, 32>}, {pipeline_mode = #tpu.pipeline_mode<synchronous>, transform_indices = @transform_3, window_bounds = array<i64: 32, 32>}, {pipeline_mode = #tpu.pipeline_mode<synchronous>, transform_indices = @transform_4, window_bounds = array<i64: 32, 32>}, {pipeline_mode = #tpu.pipeline_mode<synchronous>, transform_indices = @transform_5, window_bounds = array<i64: 1, 32>}, {pipeline_mode = #tpu.pipeline_mode<synchronous>, transform_indices = @transform_6, window_bounds = array<i64: 1, 32>}, {pipeline_mode = #tpu.pipeline_mode<synchronous>, transform_indices = @transform_7, window_bounds = array<i64: 1, 32>}, {transform_indices = @transform_8, window_bounds = array<i64: 1, 8, 32>}]} {
    %c0_i32 = arith.constant 0 : i32
    %0 = arith.cmpi eq, %arg1, %c0_i32 : i32
    %1 = arith.extui %0 : i1 to i32
    %c0_i32_0 = arith.constant 0 : i32
    %2 = arith.cmpi ne, %1, %c0_i32_0 : i32
    scf.if %2 {
      %c0_43 = arith.constant 0 : index
      %c0_44 = arith.constant 0 : index
      %c0_45 = arith.constant 0 : index
      %68 = vector.load %arg2[%c0_43, %c0_44, %c0_45] : memref<1x8x32xbf16, #tpu.memory_space<vmem>>, vector<1x8x32xbf16>
      %69 = vector.shape_cast %68 : vector<1x8x32xbf16> to vector<8x32xbf16>
      %c0_46 = arith.constant 0 : index
      %c0_47 = arith.constant 0 : index
      %70 = vector.load %arg4[%c0_46, %c0_47] : memref<32x32xbf16, #tpu.memory_space<vmem>>, vector<32x32xbf16>
      %cst_48 = arith.constant dense<0.000000e+00> : vector<8x32xf32>
      %71 = tpu.matmul %69, %70, %cst_48 {dimension_numbers = #tpu.dot_dimension_numbers<[1], [0], [0], [1], [0, 0, 1, 1], [], []>} : vector<8x32xbf16>, vector<32x32xbf16>, vector<8x32xf32> -> vector<8x32xf32>
      %c0_49 = arith.constant 0 : index
      %c0_50 = arith.constant 0 : index
      %72 = vector.load %arg5[%c0_49, %c0_50] : memref<32x32xbf16, #tpu.memory_space<vmem>>, vector<32x32xbf16>
      %cst_51 = arith.constant dense<0.000000e+00> : vector<8x32xf32>
      %73 = tpu.matmul %69, %72, %cst_51 {dimension_numbers = #tpu.dot_dimension_numbers<[1], [0], [0], [1], [0, 0, 1, 1], [], []>} : vector<8x32xbf16>, vector<32x32xbf16>, vector<8x32xf32> -> vector<8x32xf32>
      %c0_52 = arith.constant 0 : index
      %c0_53 = arith.constant 0 : index
      %74 = vector.load %arg8[%c0_52, %c0_53] : memref<1x32xf32, #tpu.memory_space<vmem>>, vector<1x32xf32>
      %75 = vector.broadcast %74 : vector<1x32xf32> to vector<8x32xf32>
      %76 = arith.addf %73, %75 : vector<8x32xf32>
      %77 = arith.truncf %71 : vector<8x32xf32> to vector<8x32xbf16>
      %78 = arith.truncf %76 : vector<8x32xf32> to vector<8x32xbf16>
      %79 = vector.extract_strided_slice %77 {offsets = [0, 0], sizes = [8, 8], strides = [1, 1]} : vector<8x32xbf16> to vector<8x8xbf16>
      %c0_54 = arith.constant 0 : index
      %c0_55 = arith.constant 0 : index
      %c0_56 = arith.constant 0 : index
      %80 = vector.load %arg11[%c0_54, %c0_55, %c0_56] : memref<4x8x8xbf16, #tpu.memory_space<vmem>>, vector<1x8x8xbf16>
      %81 = vector.shape_cast %80 : vector<1x8x8xbf16> to vector<8x8xbf16>
      %82 = vector.shape_cast %79 : vector<8x8xbf16> to vector<1x8x8xbf16>
      tpu.vector_store %arg11[%c0_54, %c0_55, %c0_56], %82 {strides = array<i32>} : memref<4x8x8xbf16, #tpu.memory_space<vmem>>, vector<1x8x8xbf16>,
      %83 = vector.extract_strided_slice %78 {offsets = [0, 0], sizes = [8, 8], strides = [1, 1]} : vector<8x32xbf16> to vector<8x8xbf16>
      %c0_57 = arith.constant 0 : index
      %c0_58 = arith.constant 0 : index
      %c0_59 = arith.constant 0 : index
      %84 = vector.load %arg12[%c0_57, %c0_58, %c0_59] : memref<4x8x8xbf16, #tpu.memory_space<vmem>>, vector<1x8x8xbf16>
      %85 = vector.shape_cast %84 : vector<1x8x8xbf16> to vector<8x8xbf16>
      %86 = vector.shape_cast %83 : vector<8x8xbf16> to vector<1x8x8xbf16>
      tpu.vector_store %arg12[%c0_57, %c0_58, %c0_59], %86 {strides = array<i32>} : memref<4x8x8xbf16, #tpu.memory_space<vmem>>, vector<1x8x8xbf16>,
      %87 = vector.extract_strided_slice %77 {offsets = [0, 8], sizes = [8, 8], strides = [1, 1]} : vector<8x32xbf16> to vector<8x8xbf16>
      %c1_60 = arith.constant 1 : index
      %c0_61 = arith.constant 0 : index
      %c0_62 = arith.constant 0 : index
      %88 = vector.load %arg11[%c1_60, %c0_61, %c0_62] : memref<4x8x8xbf16, #tpu.memory_space<vmem>>, vector<1x8x8xbf16>
      %89 = vector.shape_cast %88 : vector<1x8x8xbf16> to vector<8x8xbf16>
      %90 = vector.shape_cast %87 : vector<8x8xbf16> to vector<1x8x8xbf16>
      tpu.vector_store %arg11[%c1_60, %c0_61, %c0_62], %90 {strides = array<i32>} : memref<4x8x8xbf16, #tpu.memory_space<vmem>>, vector<1x8x8xbf16>,
      %91 = vector.extract_strided_slice %78 {offsets = [0, 8], sizes = [8, 8], strides = [1, 1]} : vector<8x32xbf16> to vector<8x8xbf16>
      %c1_63 = arith.constant 1 : index
      %c0_64 = arith.constant 0 : index
      %c0_65 = arith.constant 0 : index
      %92 = vector.load %arg12[%c1_63, %c0_64, %c0_65] : memref<4x8x8xbf16, #tpu.memory_space<vmem>>, vector<1x8x8xbf16>
      %93 = vector.shape_cast %92 : vector<1x8x8xbf16> to vector<8x8xbf16>
      %94 = vector.shape_cast %91 : vector<8x8xbf16> to vector<1x8x8xbf16>
      tpu.vector_store %arg12[%c1_63, %c0_64, %c0_65], %94 {strides = array<i32>} : memref<4x8x8xbf16, #tpu.memory_space<vmem>>, vector<1x8x8xbf16>,
      %95 = vector.extract_strided_slice %77 {offsets = [0, 16], sizes = [8, 8], strides = [1, 1]} : vector<8x32xbf16> to vector<8x8xbf16>
      %c2_66 = arith.constant 2 : index
      %c0_67 = arith.constant 0 : index
      %c0_68 = arith.constant 0 : index
      %96 = vector.load %arg11[%c2_66, %c0_67, %c0_68] : memref<4x8x8xbf16, #tpu.memory_space<vmem>>, vector<1x8x8xbf16>
      %97 = vector.shape_cast %96 : vector<1x8x8xbf16> to vector<8x8xbf16>
      %98 = vector.shape_cast %95 : vector<8x8xbf16> to vector<1x8x8xbf16>
      tpu.vector_store %arg11[%c2_66, %c0_67, %c0_68], %98 {strides = array<i32>} : memref<4x8x8xbf16, #tpu.memory_space<vmem>>, vector<1x8x8xbf16>,
      %99 = vector.extract_strided_slice %78 {offsets = [0, 16], sizes = [8, 8], strides = [1, 1]} : vector<8x32xbf16> to vector<8x8xbf16>
      %c2_69 = arith.constant 2 : index
      %c0_70 = arith.constant 0 : index
      %c0_71 = arith.constant 0 : index
      %100 = vector.load %arg12[%c2_69, %c0_70, %c0_71] : memref<4x8x8xbf16, #tpu.memory_space<vmem>>, vector<1x8x8xbf16>
      %101 = vector.shape_cast %100 : vector<1x8x8xbf16> to vector<8x8xbf16>
      %102 = vector.shape_cast %99 : vector<8x8xbf16> to vector<1x8x8xbf16>
      tpu.vector_store %arg12[%c2_69, %c0_70, %c0_71], %102 {strides = array<i32>} : memref<4x8x8xbf16, #tpu.memory_space<vmem>>, vector<1x8x8xbf16>,
      %103 = vector.extract_strided_slice %77 {offsets = [0, 24], sizes = [8, 8], strides = [1, 1]} : vector<8x32xbf16> to vector<8x8xbf16>
      %c3_72 = arith.constant 3 : index
      %c0_73 = arith.constant 0 : index
      %c0_74 = arith.constant 0 : index
      %104 = vector.load %arg11[%c3_72, %c0_73, %c0_74] : memref<4x8x8xbf16, #tpu.memory_space<vmem>>, vector<1x8x8xbf16>
      %105 = vector.shape_cast %104 : vector<1x8x8xbf16> to vector<8x8xbf16>
      %106 = vector.shape_cast %103 : vector<8x8xbf16> to vector<1x8x8xbf16>
      tpu.vector_store %arg11[%c3_72, %c0_73, %c0_74], %106 {strides = array<i32>} : memref<4x8x8xbf16, #tpu.memory_space<vmem>>, vector<1x8x8xbf16>,
      %107 = vector.extract_strided_slice %78 {offsets = [0, 24], sizes = [8, 8], strides = [1, 1]} : vector<8x32xbf16> to vector<8x8xbf16>
      %c3_75 = arith.constant 3 : index
      %c0_76 = arith.constant 0 : index
      %c0_77 = arith.constant 0 : index
      %108 = vector.load %arg12[%c3_75, %c0_76, %c0_77] : memref<4x8x8xbf16, #tpu.memory_space<vmem>>, vector<1x8x8xbf16>
      %109 = vector.shape_cast %108 : vector<1x8x8xbf16> to vector<8x8xbf16>
      %110 = vector.shape_cast %107 : vector<8x8xbf16> to vector<1x8x8xbf16>
      tpu.vector_store %arg12[%c3_75, %c0_76, %c0_77], %110 {strides = array<i32>} : memref<4x8x8xbf16, #tpu.memory_space<vmem>>, vector<1x8x8xbf16>,
    } else {
    }
    %c8_i32 = arith.constant 8 : i32
    %3 = arith.muli %arg1, %c8_i32 : i32
    %4 = tpu.assume_multiple %3, 8 : i32
    %c0 = arith.constant 0 : index
    %5 = arith.index_cast %4 : i32 to index
    %c0_1 = arith.constant 0 : index
    %6 = vector.load %arg2[%c0, %5, %c0_1] : memref<1x8x32xbf16, #tpu.memory_space<vmem>>, vector<1x8x32xbf16>
    %7 = vector.shape_cast %6 : vector<1x8x32xbf16> to vector<8x32xbf16>
    %c0_2 = arith.constant 0 : index
    %c0_3 = arith.constant 0 : index
    %8 = vector.load %arg3[%c0_2, %c0_3] : memref<32x32xbf16, #tpu.memory_space<vmem>>, vector<32x32xbf16>
    %cst = arith.constant dense<0.000000e+00> : vector<8x32xf32>
    %9 = tpu.matmul %7, %8, %cst {dimension_numbers = #tpu.dot_dimension_numbers<[1], [0], [0], [1], [0, 0, 1, 1], [], []>} : vector<8x32xbf16>, vector<32x32xbf16>, vector<8x32xf32> -> vector<8x32xf32>
    %c0_4 = arith.constant 0 : index
    %c0_5 = arith.constant 0 : index
    %10 = vector.load %arg7[%c0_4, %c0_5] : memref<1x32xf32, #tpu.memory_space<vmem>>, vector<1x32xf32>
    %11 = vector.broadcast %10 : vector<1x32xf32> to vector<8x32xf32>
    %12 = arith.addf %9, %11 : vector<8x32xf32>
    %13 = arith.truncf %12 : vector<8x32xf32> to vector<8x32xbf16>
    %14 = vector.extract_strided_slice %13 {offsets = [0, 0], sizes = [8, 8], strides = [1, 1]} : vector<8x32xbf16> to vector<8x8xbf16>
    %c0_6 = arith.constant 0 : index
    %c0_7 = arith.constant 0 : index
    %c0_8 = arith.constant 0 : index
    %15 = vector.load %arg13[%c0_6, %c0_7, %c0_8] : memref<4x8x8xbf16, #tpu.memory_space<vmem>>, vector<1x8x8xbf16>
    %16 = vector.shape_cast %15 : vector<1x8x8xbf16> to vector<8x8xbf16>
    %17 = vector.shape_cast %14 : vector<8x8xbf16> to vector<1x8x8xbf16>
    tpu.vector_store %arg13[%c0_6, %c0_7, %c0_8], %17 {strides = array<i32>} : memref<4x8x8xbf16, #tpu.memory_space<vmem>>, vector<1x8x8xbf16>,
    %18 = vector.extract_strided_slice %13 {offsets = [0, 8], sizes = [8, 8], strides = [1, 1]} : vector<8x32xbf16> to vector<8x8xbf16>
    %c1 = arith.constant 1 : index
    %c0_9 = arith.constant 0 : index
    %c0_10 = arith.constant 0 : index
    %19 = vector.load %arg13[%c1, %c0_9, %c0_10] : memref<4x8x8xbf16, #tpu.memory_space<vmem>>, vector<1x8x8xbf16>
    %20 = vector.shape_cast %19 : vector<1x8x8xbf16> to vector<8x8xbf16>
    %21 = vector.shape_cast %18 : vector<8x8xbf16> to vector<1x8x8xbf16>
    tpu.vector_store %arg13[%c1, %c0_9, %c0_10], %21 {strides = array<i32>} : memref<4x8x8xbf16, #tpu.memory_space<vmem>>, vector<1x8x8xbf16>,
    %22 = vector.extract_strided_slice %13 {offsets = [0, 16], sizes = [8, 8], strides = [1, 1]} : vector<8x32xbf16> to vector<8x8xbf16>
    %c2 = arith.constant 2 : index
    %c0_11 = arith.constant 0 : index
    %c0_12 = arith.constant 0 : index
    %23 = vector.load %arg13[%c2, %c0_11, %c0_12] : memref<4x8x8xbf16, #tpu.memory_space<vmem>>, vector<1x8x8xbf16>
    %24 = vector.shape_cast %23 : vector<1x8x8xbf16> to vector<8x8xbf16>
    %25 = vector.shape_cast %22 : vector<8x8xbf16> to vector<1x8x8xbf16>
    tpu.vector_store %arg13[%c2, %c0_11, %c0_12], %25 {strides = array<i32>} : memref<4x8x8xbf16, #tpu.memory_space<vmem>>, vector<1x8x8xbf16>,
    %26 = vector.extract_strided_slice %13 {offsets = [0, 24], sizes = [8, 8], strides = [1, 1]} : vector<8x32xbf16> to vector<8x8xbf16>
    %c3 = arith.constant 3 : index
    %c0_13 = arith.constant 0 : index
    %c0_14 = arith.constant 0 : index
    %27 = vector.load %arg13[%c3, %c0_13, %c0_14] : memref<4x8x8xbf16, #tpu.memory_space<vmem>>, vector<1x8x8xbf16>
    %28 = vector.shape_cast %27 : vector<1x8x8xbf16> to vector<8x8xbf16>
    %29 = vector.shape_cast %26 : vector<8x8xbf16> to vector<1x8x8xbf16>
    tpu.vector_store %arg13[%c3, %c0_13, %c0_14], %29 {strides = array<i32>} : memref<4x8x8xbf16, #tpu.memory_space<vmem>>, vector<1x8x8xbf16>,
    %c0_15 = arith.constant 0 : index
    %c0_16 = arith.constant 0 : index
    %c0_17 = arith.constant 0 : index
    %30 = vector.load %arg13[%c0_15, %c0_16, %c0_17] : memref<4x8x8xbf16, #tpu.memory_space<vmem>>, vector<4x8x8xbf16>
    %c0_18 = arith.constant 0 : index
    %c0_19 = arith.constant 0 : index
    %c0_20 = arith.constant 0 : index
    %31 = vector.load %arg11[%c0_18, %c0_19, %c0_20] : memref<4x8x8xbf16, #tpu.memory_space<vmem>>, vector<4x8x8xbf16>
    %cst_21 = arith.constant dense<0.000000e+00> : vector<4x8x8xf32>
    %32 = tpu.matmul %30, %31, %cst_21 {dimension_numbers = #tpu.dot_dimension_numbers<[2], [2], [1], [1], [0, 0, 0, 1, 1, 1], [0], [0]>} : vector<4x8x8xbf16>, vector<4x8x8xbf16>, vector<4x8x8xf32> -> vector<4x8x8xf32>
    %cst_22 = arith.constant dense<0xFF800000> : vector<4x8xf32>
    %33 = vector.multi_reduction <maximumf>, %32, %cst_22 [2] : vector<4x8x8xf32> to vector<4x8xf32>
    %34 = vector.shape_cast %33 : vector<4x8xf32> to vector<4x8x1xf32>
    %35 = vector.broadcast %34 : vector<4x8x1xf32> to vector<4x8x8xf32>
    %36 = arith.subf %32, %35 : vector<4x8x8xf32>
    %37 = math.exp %36 : vector<4x8x8xf32>
    %cst_23 = arith.constant dense<0.000000e+00> : vector<4x8xf32>
    %38 = vector.multi_reduction <add>, %37, %cst_23 [2] : vector<4x8x8xf32> to vector<4x8xf32>
    %39 = vector.shape_cast %38 : vector<4x8xf32> to vector<4x8x1xf32>
    %40 = arith.truncf %37 : vector<4x8x8xf32> to vector<4x8x8xbf16>
    %c0_24 = arith.constant 0 : index
    %c0_25 = arith.constant 0 : index
    %c0_26 = arith.constant 0 : index
    %41 = vector.load %arg12[%c0_24, %c0_25, %c0_26] : memref<4x8x8xbf16, #tpu.memory_space<vmem>>, vector<4x8x8xbf16>
    %cst_27 = arith.constant dense<0.000000e+00> : vector<4x8x8xf32>
    %42 = tpu.matmul %40, %41, %cst_27 {dimension_numbers = #tpu.dot_dimension_numbers<[2], [1], [1], [2], [0, 0, 0, 1, 1, 2], [0], [0]>} : vector<4x8x8xbf16>, vector<4x8x8xbf16>, vector<4x8x8xf32> -> vector<4x8x8xf32>
    %43 = tpu.reciprocal %39 {approx = true} : vector<4x8x1xf32> -> vector<4x8x1xf32>
    %44 = vector.broadcast %43 : vector<4x8x1xf32> to vector<4x8x8xf32>
    %45 = arith.mulf %42, %44 : vector<4x8x8xf32>
    %46 = arith.truncf %45 : vector<4x8x8xf32> to vector<4x8x8xbf16>
    %47 = vector.extract_strided_slice %46 {offsets = [0, 0, 0], sizes = [1, 8, 8], strides = [1, 1, 1]} : vector<4x8x8xbf16> to vector<1x8x8xbf16>
    %48 = vector.shape_cast %47 : vector<1x8x8xbf16> to vector<8x8xbf16>
    %c0_28 = arith.constant 0 : index
    %c0_29 = arith.constant 0 : index
    %49 = vector.load %arg14[%c0_28, %c0_29] : memref<8x32xbf16, #tpu.memory_space<vmem>>, vector<8x8xbf16>
    tpu.vector_store %arg14[%c0_28, %c0_29], %48 {strides = array<i32>} : memref<8x32xbf16, #tpu.memory_space<vmem>>, vector<8x8xbf16>,
    %50 = vector.extract_strided_slice %46 {offsets = [1, 0, 0], sizes = [1, 8, 8], strides = [1, 1, 1]} : vector<4x8x8xbf16> to vector<1x8x8xbf16>
    %51 = vector.shape_cast %50 : vector<1x8x8xbf16> to vector<8x8xbf16>
    %c0_30 = arith.constant 0 : index
    %c8 = arith.constant 8 : index
    %52 = vector.load %arg14[%c0_30, %c8] : memref<8x32xbf16, #tpu.memory_space<vmem>>, vector<8x8xbf16>
    tpu.vector_store %arg14[%c0_30, %c8], %51 {strides = array<i32>} : memref<8x32xbf16, #tpu.memory_space<vmem>>, vector<8x8xbf16>,
    %53 = vector.extract_strided_slice %46 {offsets = [2, 0, 0], sizes = [1, 8, 8], strides = [1, 1, 1]} : vector<4x8x8xbf16> to vector<1x8x8xbf16>
    %54 = vector.shape_cast %53 : vector<1x8x8xbf16> to vector<8x8xbf16>
    %c0_31 = arith.constant 0 : index
    %c16 = arith.constant 16 : index
    %55 = vector.load %arg14[%c0_31, %c16] : memref<8x32xbf16, #tpu.memory_space<vmem>>, vector<8x8xbf16>
    tpu.vector_store %arg14[%c0_31, %c16], %54 {strides = array<i32>} : memref<8x32xbf16, #tpu.memory_space<vmem>>, vector<8x8xbf16>,
    %56 = vector.extract_strided_slice %46 {offsets = [3, 0, 0], sizes = [1, 8, 8], strides = [1, 1, 1]} : vector<4x8x8xbf16> to vector<1x8x8xbf16>
    %57 = vector.shape_cast %56 : vector<1x8x8xbf16> to vector<8x8xbf16>
    %c0_32 = arith.constant 0 : index
    %c24 = arith.constant 24 : index
    %58 = vector.load %arg14[%c0_32, %c24] : memref<8x32xbf16, #tpu.memory_space<vmem>>, vector<8x8xbf16>
    tpu.vector_store %arg14[%c0_32, %c24], %57 {strides = array<i32>} : memref<8x32xbf16, #tpu.memory_space<vmem>>, vector<8x8xbf16>,
    %c0_33 = arith.constant 0 : index
    %c0_34 = arith.constant 0 : index
    %59 = vector.load %arg14[%c0_33, %c0_34] : memref<8x32xbf16, #tpu.memory_space<vmem>>, vector<8x32xbf16>
    %c0_35 = arith.constant 0 : index
    %c0_36 = arith.constant 0 : index
    %60 = vector.load %arg6[%c0_35, %c0_36] : memref<32x32xbf16, #tpu.memory_space<vmem>>, vector<32x32xbf16>
    %cst_37 = arith.constant dense<0.000000e+00> : vector<8x32xf32>
    %61 = tpu.matmul %59, %60, %cst_37 {dimension_numbers = #tpu.dot_dimension_numbers<[1], [0], [0], [1], [0, 0, 1, 1], [], []>} : vector<8x32xbf16>, vector<32x32xbf16>, vector<8x32xf32> -> vector<8x32xf32>
    %c0_38 = arith.constant 0 : index
    %c0_39 = arith.constant 0 : index
    %62 = vector.load %arg9[%c0_38, %c0_39] : memref<1x32xf32, #tpu.memory_space<vmem>>, vector<1x32xf32>
    %63 = vector.broadcast %62 : vector<1x32xf32> to vector<8x32xf32>
    %64 = arith.addf %61, %63 : vector<8x32xf32>
    %c0_40 = arith.constant 0 : index
    %c0_41 = arith.constant 0 : index
    %c0_42 = arith.constant 0 : index
    %65 = vector.load %arg10[%c0_40, %c0_41, %c0_42] : memref<1x8x32xf32, #tpu.memory_space<vmem>>, vector<1x8x32xf32>
    %66 = vector.shape_cast %65 : vector<1x8x32xf32> to vector<8x32xf32>
    %67 = vector.shape_cast %64 : vector<8x32xf32> to vector<1x8x32xf32>
    tpu.vector_store %arg10[%c0_40, %c0_41, %c0_42], %67 {strides = array<i32>} : memref<1x8x32xf32, #tpu.memory_space<vmem>>, vector<1x8x32xf32>,
    return
  }
  func.func @transform_0(%arg0: i32, %arg1: i32) -> (i32, i32, i32) {
    %c0_i32 = arith.constant 0 : i32
    %c0_i32_0 = arith.constant 0 : i32
    %c0_i32_1 = arith.constant 0 : i32
    return %arg0, %c0_i32, %c0_i32_0 : i32, i32, i32
  }
  func.func @transform_1(%arg0: i32, %arg1: i32) -> (i32, i32) {
    %c0_i32 = arith.constant 0 : i32
    %c0_i32_0 = arith.constant 0 : i32
    %c0_i32_1 = arith.constant 0 : i32
    return %c0_i32, %c0_i32_0 : i32, i32
  }
  func.func @transform_2(%arg0: i32, %arg1: i32) -> (i32, i32) {
    %c0_i32 = arith.constant 0 : i32
    %c0_i32_0 = arith.constant 0 : i32
    %c0_i32_1 = arith.constant 0 : i32
    return %c0_i32, %c0_i32_0 : i32, i32
  }
  func.func @transform_3(%arg0: i32, %arg1: i32) -> (i32, i32) {
    %c0_i32 = arith.constant 0 : i32
    %c0_i32_0 = arith.constant 0 : i32
    %c0_i32_1 = arith.constant 0 : i32
    return %c0_i32, %c0_i32_0 : i32, i32
  }
  func.func @transform_4(%arg0: i32, %arg1: i32) -> (i32, i32) {
    %c0_i32 = arith.constant 0 : i32
    %c0_i32_0 = arith.constant 0 : i32
    %c0_i32_1 = arith.constant 0 : i32
    return %c0_i32, %c0_i32_0 : i32, i32
  }
  func.func @transform_5(%arg0: i32, %arg1: i32) -> (i32, i32) {
    %c0_i32 = arith.constant 0 : i32
    %c0_i32_0 = arith.constant 0 : i32
    %c0_i32_1 = arith.constant 0 : i32
    return %c0_i32, %c0_i32_0 : i32, i32
  }
  func.func @transform_6(%arg0: i32, %arg1: i32) -> (i32, i32) {
    %c0_i32 = arith.constant 0 : i32
    %c0_i32_0 = arith.constant 0 : i32
    %c0_i32_1 = arith.constant 0 : i32
    return %c0_i32, %c0_i32_0 : i32, i32
  }
  func.func @transform_7(%arg0: i32, %arg1: i32) -> (i32, i32) {
    %c0_i32 = arith.constant 0 : i32
    %c0_i32_0 = arith.constant 0 : i32
    %c0_i32_1 = arith.constant 0 : i32
    return %c0_i32, %c0_i32_0 : i32, i32
  }
  func.func @transform_8(%arg0: i32, %arg1: i32) -> (i32, i32, i32) {
    %c0_i32 = arith.constant 0 : i32
    %c0_i32_0 = arith.constant 0 : i32
    return %arg0, %arg1, %c0_i32 : i32, i32, i32
  }
}

</mosaic_0001>

<bundles_post_ra>
// kernel: tpu_custom_call.1
= control target key start
LH: loop header
LB: loop body
LE: loop exit
PB: predicated region body
PF: predicated region fallthrough
CT: control target
= control target key end

     0   :  { %s1714_s0 = inlined_call_operand.hbm [shape: bf16[2,8,32], index: 0, kind: input, shape index: {}]   ;;  %s1715_s1 = inlined_call_operand.hbm [shape: bf16[32,32], index: 1, kind: input, shape index: {}]   ;;  %s1716_s2 = inlined_call_operand.hbm [shape: bf16[32,32], index: 2, kind: input, shape index: {}]   ;;  %s1717_s3 = inlined_call_operand.hbm [shape: bf16[32,32], index: 3, kind: input, shape index: {}]   ;;  %s1718_s4 = inlined_call_operand.hbm [shape: bf16[32,32], index: 4, kind: input, shape index: {}]   ;;  %s1719_s5 = inlined_call_operand.vmem [shape: f32[1,32], index: 5, kind: input, shape index: {}]   ;;  %s1720_s6 = inlined_call_operand.vmem [shape: f32[1,32], index: 6, kind: input, shape index: {}]   ;;  %s1721_s7 = inlined_call_operand.vmem [shape: f32[1,32], index: 7, kind: input, shape index: {}]   ;;  %s1722_s8 = inlined_call_operand.hbm [shape: f32[2,8,32], index: 8, kind: output, shape index: {}]  }
   0x1   :  { %1723 = sst [smem:[#allocation20_spill]] %s1715_s1 }
   0x2   :  { %1724 = sst [smem:[#allocation21_spill]] %s1716_s2 }
   0x3   :  { %1725 = sst [smem:[#allocation22_spill]] %s1717_s3 }
   0x4   :  { %13 = vsyncpa [#allocation7], 0 }
   0x5   :  { %15 = vsyncpa [#allocation7 + $0x1], 0 }
   0x6   :  { %16 = vsyncpa [#allocation10], 0 }
   0x7   :  { %17 = vsyncpa [#allocation13], 0 }
   0x8   :  { %18 = vsyncpa [#allocation8], 0 }
   0x9   :  { %20 = vsyncpa [#allocation8 + $0x1], 0  ;;  %s1487_s27 = smov 0   ;;  %s1489_s28 = smov 0  }
   0xa   :  { %s1491_s29 = smov 0   ;;  %s1493_s30 = smov 0  }
   0xb   :  { %s1495_s9 = smov 0   ;;  %s1497_s10 = smov 0  }
   0xc LB: > { %s985_s11 = sadd.s32 4294967295, %s1428_s10   ;;  %p987_p0 = scmp.ge.s32.totalorder %s1428_s10, 1  ;;  %s1428_s10 = sphi %s1497_s10, %s26_s10   ;;  %s1424_s9 = sphi %s1495_s9, %s1739_s9   ;;  %s1420_s30 = sphi %s1493_s30, %s1738_s30   ;;  %s1416_s29 = sphi %s1491_s29, %s1737_s29   ;;  %s1412_s28 = sphi %s1489_s28, %s1736_s28   ;;  %s1408_s27 = sphi %s1487_s27, %s1735_s27  }
   0xd   : > { %p1521_p1 = scmp.eq.s32.totalorder %s985_s11, 0  ;;  %p244_p2 = scmp.lt.s32.totalorder %s1428_s10, 3 }
   0xe   : > { %s1727_s1 = sld [smem:[#allocation20_spill]]  ;;  %s1430_s17 = smov [#allocation9]  }
   0xf   : > { %p1529_p3 = pnand %p987_p0, %p244_p2  ;;  %s257_s18 = sshll.u32 %s1430_s17, 4  ;;  %s258_s18 = int_to_ptr.vmem [resolvable:$true] %s257_s18 }
  0x10   : > { %p992_p6 = scmp.ge.s32.totalorder %s1428_s10, 2  ;;  %s1730_s3 = sld [smem:[#allocation22_spill]] }
  0x11   : > { %p1078_p4 = pneg %p1529_p3  ;;  %s1431_s23 = smov 64  }
  0x12   : > { %s1432_s24 = smov 4   ;;  %s1433_s25 = smov [#allocation12]  }
  0x13   : > { %p1537_p5 = pnand %p1078_p4, %p1521_p1  ;;  %s285_s26 = sshll.u32 %s1433_s25, 4  ;;  %s286_s26 = int_to_ptr.vmem [resolvable:$true] %s285_s26 }
  0x14   : > { %s255_s15 = sshll.u32 %s1727_s1, 4  ;;  %s1731_s2 = sld [smem:[#allocation21_spill]]  ;;  %s256_s15 = int_to_ptr.hbm [resolvable:$true] %s255_s15 }
  0x15   : > { %1081 = dma.hbm_to_vmem [thread:$0]  (!%p1537_p5), %s256_s15, 256, %s258_s18, [#allocation10], %s1431_s23, %s1431_s23, %s1432_s24  }
  0x16   : > { %s283_s22 = sshll.u32 %s1730_s3, 4  ;;  %s297_s15 = sshll.u32 %s1718_s4, 4  ;;  %s284_s22 = int_to_ptr.hbm [resolvable:$true] %s283_s22  ;;  %s298_s15 = int_to_ptr.hbm [resolvable:$true] %s297_s15 }
  0x17   : > { %1087 = dma.hbm_to_vmem [thread:$0]  (!%p1537_p5), %s284_s22, 256, %s286_s26, [#allocation13], %s1431_s23, %s1431_s23, %s1432_s24  }
  0x18   : > { %s1434_s18 = smov [#allocation11]   ;;  %s1435_s13 = smov [#allocation14]  }
  0x19   : > { %s271_s25 = sshll.u32 %s1434_s18, 4  ;;  %s299_s14 = sshll.u32 %s1435_s13, 4  ;;  %s272_s25 = int_to_ptr.vmem [resolvable:$true] %s271_s25  ;;  %s300_s14 = int_to_ptr.vmem [resolvable:$true] %s299_s14 }
  0x1a   : > { %s269_s17 = sshll.u32 %s1731_s2, 4  ;;  %s38_s22 = sadd.s32 1, %s1424_s9  ;;  %s270_s17 = int_to_ptr.hbm [resolvable:$true] %s269_s17 }
  0x1b   : > { %1084 = dma.hbm_to_vmem [thread:$0]  (!%p1537_p5), %s270_s17, 256, %s272_s25, [#allocation10], %s1431_s23, %s1431_s23, %s1432_s24  }
  0x1c   : > { %1090 = dma.hbm_to_vmem [thread:$0]  (!%p1537_p5), %s298_s15, 256, %s300_s14, [#allocation13], %s1431_s23, %s1431_s23, %s1432_s24  }
  0x1d   : > { %s986_s26 = sadd.s32 4294967294, %s1428_s10   ;;  %p40_p7 = scmp.ge.s32.totalorder %s38_s22, 2 }
  0x1e   : > { %s45_s20 = sadd.s32 1, %s1416_s29  ;;  %p52_p8 = scmp.ne.s32.totalorder %s1416_s29, %s1412_s28 }
  0x1f   : > { %s1741_s22 = smov (%p40_p7, %s38_s22), 0  ;;  %p53_p9 = scmp.eq.s32.totalorder %s1428_s10, 0 }
  0x20   : > { %p58_p10 = scmp.ne.s32.totalorder %s1412_s28, %s1408_s27  ;;  %s42_s17 = ssub.s32 %s1424_s9, %s1741_s22 }
  0x21   : > { %p231_p11 = scmp.eq.s32.totalorder %s985_s11, 1  ;;  %p43_p12 = scmp.eq.s32.totalorder %s42_s17, 0 }
  0x22   : > { %p1575_p13 = por %p1521_p1, %p58_p10  ;;  %p237_p2 = scmp.eq.s32.totalorder %s986_s26, 1 }
  0x23   : > { %p1579_p0 = por %p231_p11, %p52_p8  ;;  %p54_p4 = por %p53_p9, %p52_p8 }
  0x24   : > { %s1584_s24 = scalar_select %p43_p12, %s1416_s29, %s45_s20  }
  0x25   : > { %p1586_p5 = por %p237_p2, %p58_p10  ;;  %s322_s15 = sand.u32 1, %s1416_s29  }
  0x26   : > { %s994_s11 = sshll.u32 %s1424_s9, 2  ;;  %p1103_p7 = scmp.lt.s32.totalorder %s1428_s10, 2 }
  0x27   : > { %s993_s18 = sshll.u32 %s322_s15, 2  ;;  %s330_s14 = scalar_lea.hbm %s1714_s0, %s994_s11 }
  0x28   : > { %s332_s17 = sshll.u32 %s330_s14, 4  ;;  %s326_s1 = scalar_lea.vmem [#allocation6], %s993_s18  ;;  %s333_s17 = int_to_ptr.hbm [resolvable:$true] %s332_s17 }
  0x29   : > { %s334_s2 = sshll.u32 %s326_s1, 4  ;;  %p1092_p11 = pnand %p1103_p7, %p54_p4  ;;  %s335_s2 = int_to_ptr.vmem [resolvable:$true] %s334_s2 }
  0x2a   : > { %s323_s26 = scalar_lea.sflag [#allocation7], %s322_s15  ;;  %343 = sbr.rel (%p1529_p3) target bundleno = 994 (0x3e2), region = 52 }
  0x2b   : > { %1094 = dma.hbm_to_vmem [thread:$0]  (!%p1092_p11), %s333_s17, 64, %s335_s2, %s323_s26  }
  0x2c   : > { %s1599_s20 = sand.u32 (!%p1529_p3), 1, %s1412_s28  }
  0x2d   : > { %s996_s3 = sshll.u32 (!%p1529_p3), %s1599_s20, 2  ;;  %s346_s25 = scalar_lea.sflag (!%p1529_p3), [#allocation7], %s1599_s20 }
  0x2e   : > { %s349_s11 = scalar_lea.vmem (!%p1529_p3), [#allocation6], %s996_s3 }
  0x2f   : > { %1391 = dma.done.wait (%p1575_p13), %s346_s25, 64  }
  0x30   : > { %1393 = vsyncadd (%p1575_p13), %s346_s25, 4294967232 }
  0x31   : > { %1395 = dma.done.wait (%p1521_p1), [#allocation10], 512  }
  0x32   : > { %1397 = vsyncadd (%p1521_p1), [#allocation10], 4294966784 }
  0x33   : > { %1399 = dma.done.wait (%p1521_p1), [#allocation13], 512  }
  0x34   : > { %1401 = vsyncadd (%p1521_p1), [#allocation13], 4294966784  ;;  %v1051_v0 = vld [vmem:[#allocation11 + $0x8] sm:$0xff]  ;;  %v1055_v1 = vld [vmem:[#allocation9 + $0x8] sm:$0xff]  ;;  %vm425_vm0 = vcmask 261120   ;;  %vm477_vm1 = vcmask 60416  }
  0x35   : > { %v1050_v2 = vld [vmem:[#allocation11] sm:$0xff]  ;;  %v1054_v3 = vld [vmem:[#allocation9] sm:$0xff]  ;;  %435 = vmatpush.bf16.msra.mxu0 %v1051_v0  ;;  %548 = vmatpush.bf16.msra.mxu2 %v1055_v1  ;;  %v408_v4 = vld [vmem:[%s349_s11] sm:$0xf]  ;;  %s1436_s1 = smov 120   ;;  %s1437_s2 = smov 104  }
  0x36   : > { %v517_v5 = vld [vmem:[%s349_s11] sm:$0xf]  ;;  %v1053_v6 = vld [vmem:[#allocation12 + $0x8] sm:$0xff]  ;;  %v1052_v7 = vld [vmem:[#allocation12] sm:$0xff]  ;;  %vm582_vm2 = vcmask 64512   ;;  %s1438_s16 = smov 112  }
  0x37   : > { %468 = vmatpush.bf16.msra.mxu1 %v1053_v6  ;;  %v1169_v10 = vld [vmem:[%s1719_s5] ss:$0 sm:$0xff]  ;;  %vm706_vm3 = vcmask 1043456   ;;  %s1439_s18 = smov 8   ;;  %s1440_s13 = smov 24   ;;  %vm797_vm4 = vcmask 126016  }
  0x38   : > { %v1170_v30 = vld [vmem:[%s1720_s6] ss:$0 sm:$0xff]  ;;  %s1441_s14 = smov 16   ;;  %vm803_vm5 = vcmask 191616   ;;  %vm809_vm6 = vcmask 257216   ;;  %s1047_s17 = sshll.u32 %s1420_s30, 3 }
  0x39   : > { %436 = vmatpush.bf16.msra.mxu0 %v1050_v2  ;;  %549 = vmatpush.bf16.msra.mxu2 %v1054_v3  ;;  %s1001_s26 = sshll.u32 %s1599_s20, 3  ;;  %s850_s30 = scalar_lea.sflag [#allocation8], %s1599_s20 }
  0x3a   : > { %s402_s12 = scalar_lea.vmem [#allocation15], %s1001_s26 }
  0x3b   : > { %469 = vmatpush.bf16.msra.mxu1 %v1052_v7 }
  0x3c   : > { %1010 = vmatmul.msk.bf16.vlgmr.msra.gmra.mxu0 %vm425_vm0, %v408_v4  ;;  %1028 = vmatmul.msk.bf16.vlgmr.msra.gmra.mxu2 %vm425_vm0, %v517_v5 }
  0x3e   : > { %1019 = vmatmul.msk.bf16.vlgmr.msra.gmra.mxu1 %vm425_vm0, %v408_v4 }
  0xb9   : > { %v438_v8 = vpop.f32.mrf.mxu0 }
  0xba   : > { %v475_v9 = vpack.c.bf16 %v438_v8, %v438_v8 }
  0xbb   : > { %v471_v28 = vpop.f32.mrf.mxu1 }
  0xbc   : > { %478 = vst.msk [vmem:[#allocation2] sm:$0xf] %vm477_vm1, %v475_v9  ;;  %481 = vrot.lane.b32.xlu1 %v475_v9, %s1436_s1  ;;  %502 = vrot.lane.b32.xlu0 %v475_v9, %s1437_s2  ;;  %v472_v31 = vadd.f32 %v1170_v30, %v471_v28 }
  0xbe   : > { %v476_v32 = vpack.c.bf16 %v472_v31, %v472_v31 }
  0xbf   : > { %v551_v11 = vpop.f32.mrf.mxu2 }
  0xc0   : > { %v552_v12 = vadd.f32 %v1169_v10, %v551_v11  ;;  %479 = vst.msk [vmem:[#allocation3] sm:$0xf] %vm477_vm1, %v476_v32 }
  0xc1   : > { %v440_v13 = vpop.f32.mrf.mxu0 }
  0xc2   : > { %v555_v14 = vpack.c.bf16 %v552_v12, %v552_v12 }
  0xc3   : > { %v578_v15 = vld [vmem:[#allocation2] sm:$0xf]  ;;  %v473_v37 = vpop.f32.mrf.mxu1 }
  0xc4   : > { %557 = vst.msk [vmem:[#allocation4] sm:$0xf] %vm477_vm1, %v555_v14  ;;  %559 = vrot.lane.b32.xlu2 %v555_v14, %s1436_s1  ;;  %492 = vrot.lane.b32.xlu1 %v475_v9, %s1438_s16  ;;  %v587_v16 = vsel %vm582_vm2, %v578_v15, 0 }
  0xc5   : > { %569 = vrot.lane.b32.xlu0 %v555_v14, %s1437_s2  ;;  %596 = vmatpush.bf16.xpose.msra.mxu3 %v587_v16 }
  0xc7   : > { %v553_v17 = vpop.f32.mrf.mxu2  ;;  %v699_v41 = vld [vmem:[#allocation3] sm:$0xf] }
  0xc8   : > { %v708_v42 = vsel %vm706_vm3, %v699_v41, 0 }
  0xcb   : > { %v574_v18 = vld [vmem:[#allocation4] sm:$0xf] }
  0xcc   : > { %564 = vrot.lane.b32.xlu2 %v555_v14, %s1438_s16  ;;  %1029 = vmatmul.msk.bf16.vlgmr.msra.gmra.mxu3 %vm582_vm2, %v574_v18 }
  0xcd   : > { %507 = vrot.lane.b32.xlu1 %v476_v32, %s1437_s2  ;;  %717 = vmatpush.bf16.msrb.mxu3 %v708_v42 }
 0x11e   : > { %v560_v19 = vpop.permute.xlu2 %559 }
 0x11f   : > { %563 = vst.msk [vmem:[#allocation4 + $0x4] sm:$0xf] %vm477_vm1, %v560_v19 }
 0x126   : > { %v565_v20 = vpop.permute.xlu2 %564  ;;  %v575_v33 = vld [vmem:[#allocation4 + $0x4] sm:$0xf] }
 0x127   : > { %568 = vst.msk [vmem:[#allocation4 + $0x8] sm:$0xf] %vm477_vm1, %v565_v20 }
 0x12e   : > { %v482_v21 = vpop.permute.xlu1 %481  ;;  %v503_v22 = vpop.permute.xlu0 %502  ;;  %v576_v38 = vld [vmem:[#allocation4 + $0x8] sm:$0xf] }
 0x12f   : > { %485 = vst.msk [vmem:[#allocation2 + $0x4] sm:$0xf] %vm477_vm1, %v482_v21 }
 0x130   : > { %506 = vst.msk [vmem:[#allocation2 + $0xc] sm:$0xf] %vm477_vm1, %v503_v22 }
 0x136   : > { %v493_v23 = vpop.permute.xlu1 %492  ;;  %v579_v24 = vld [vmem:[#allocation2 + $0x4] sm:$0xf] }
 0x137   : > { %496 = vst.msk [vmem:[#allocation2 + $0x8] sm:$0xf] %vm477_vm1, %v493_v23  ;;  %v570_v25 = vpop.permute.xlu0 %569  ;;  %v606_v26 = vsel %vm582_vm2, %v579_v24, 0  ;;  %v581_v27 = vld [vmem:[#allocation2 + $0xc] sm:$0xf] }
 0x138   : > { %573 = vst.msk [vmem:[#allocation4 + $0xc] sm:$0xf] %vm477_vm1, %v570_v25  ;;  %615 = vmatpush.bf16.xpose.msrb.mxu0 %v606_v26  ;;  %v644_v29 = vsel %vm582_vm2, %v581_v27, 0 }
 0x139   : > { %653 = vmatpush.bf16.xpose.msrb.mxu2 %v644_v29 }
 0x13e   : > { %v580_v34 = vld [vmem:[#allocation2 + $0x8] sm:$0xf] }
 0x13f   : > { %1030 = vmatmul.msk.bf16.vlgmr.msrb.gmra.mxu0 %vm582_vm2, %v575_v33  ;;  %v577_v35 = vld [vmem:[#allocation4 + $0xc] sm:$0xf]  ;;  %v625_v36 = vsel %vm582_vm2, %v580_v34, 0  ;;  %v508_v43 = vpop.permute.xlu1 %507 }
 0x140   : > { %1032 = vmatmul.msk.bf16.vlgmr.msrb.gmra.mxu2 %vm582_vm2, %v577_v35  ;;  %634 = vmatpush.bf16.xpose.msrb.mxu1 %v625_v36  ;;  %511 = vst.msk [vmem:[#allocation3 + $0xc] sm:$0xf] %vm477_vm1, %v508_v43 }
 0x147   : > { %1031 = vmatmul.msk.bf16.vlgmr.msrb.gmra.mxu1 %vm582_vm2, %v576_v38  ;;  %v702_v54 = vld [vmem:[#allocation3 + $0xc] sm:$0xf] }
 0x148   : > { %v765_v55 = vsel %vm706_vm3, %v702_v54, 0 }
 0x149   : > { %774 = vmatpush.bf16.msra.mxu2 %v765_v55 }
 0x14f   : > { %v598_v39 = vpop.f32.mrf.mxu3 }
 0x150   : > { %v659_v53 = vsel %vm582_vm2, %v598_v39, -inf }
 0x157   : > { %v600_v40 = vpop.f32.mrf.mxu3 }
 0x1bc   : > { %v617_v44 = vpop.f32.mrf.mxu0 }
 0x1bd   : > { %v662_v45 = vsel %vm582_vm2, %v617_v44, -inf }
 0x1be   : > { %663 = vmax.xlane.f32.xlu2 %v662_v45 }
 0x1c3   : > { %v655_v46 = vpop.f32.mrf.mxu2 }
 0x1c4   : > { %v636_v47 = vpop.f32.mrf.mxu1  ;;  %v668_v48 = vsel %vm582_vm2, %v655_v46, -inf  ;;  %v619_v49 = vpop.f32.mrf.mxu0 }
 0x1c5   : > { %669 = vmax.xlane.f32.xlu0 %v668_v48  ;;  %v665_v50 = vsel %vm582_vm2, %v636_v47, -inf }
 0x1c6   : > { %666 = vmax.xlane.f32.xlu1 %v665_v50 }
 0x1cb   : > { %v657_v51 = vpop.f32.mrf.mxu2 }
 0x1cc   : > { %v638_v52 = vpop.f32.mrf.mxu1 }
 0x1cd   : > { %v1171_v52 = vld [vmem:[%s1721_s7] ss:$0 sm:$0xff] }
 0x1ce   : > { %660 = vmax.xlane.f32.xlu1 %v659_v53 }
 0x1d6   : > { %487 = vrot.lane.b32.xlu2 %v476_v32, %s1436_s1  ;;  %s861_s1 = scalar_lea.hbm %s1722_s8, %s1047_s17  ;;  %s1358_s17 = scalar_lea.hbm %s1722_s8, 16 }
 0x1d7   : > { %s865_s19 = sshll.u32 %s861_s1, 4  ;;  %s866_s19 = int_to_ptr.hbm [resolvable:$true] %s865_s19 }
 0x1d8   : > { %s1352_s15 = sshra.s32 %s866_s19, 4  ;;  %s1353_s15 = int_to_ptr.hbm [resolvable:$true] %s1352_s15 }
 0x1d9   : > { %497 = vrot.lane.b32.xlu0 %v476_v32, %s1438_s16  ;;  %s863_s16 = sshll.u32 %s402_s12, 4  ;;  %p1359_p9 = scmp.lt.s32.totalorder %s1353_s15, %s1722_s8  ;;  %s864_s16 = int_to_ptr.vmem [resolvable:$true] %s863_s16 }
 0x231   : > { %v664_v56 = vpop.xlane.xlu2 %663 }
 0x232   : > { %v672_v57 = vsub.f32 %v617_v44, %v664_v56 }
 0x234   : > { %v677_v58 = vmul.f32 1.442695, %v672_v57 }
 0x236   : > { %1172 = vpow2.f32 %v677_v58 }
 0x238   : > { %v670_v59 = vpop.xlane.xlu0 %669 }
 0x239   : > { %v674_v60 = vsub.f32 %v655_v46, %v670_v59  ;;  %v667_v61 = vpop.xlane.xlu1 %666  ;;  %v488_v62 = vpop.permute.xlu2 %487  ;;  %v1057_v46 = vld [vmem:[#allocation14 + $0x8] sm:$0xff] }
 0x23a   : > { %v673_v63 = vsub.f32 %v636_v47, %v667_v61  ;;  %491 = vst.msk [vmem:[#allocation3 + $0x4] sm:$0xf] %vm477_vm1, %v488_v62  ;;  %841 = vmatpush.bf16.msra.mxu3 %v1057_v46  ;;  %v1056_v47 = vld [vmem:[#allocation14] sm:$0xff] }
 0x23b   : > { %v681_v0 = vmul.f32 1.442695, %v674_v60 }
 0x23c   : > { %v1173_v1 = vpop.eup %1172  ;;  %v679_v2 = vmul.f32 1.442695, %v673_v63 }
 0x23d   : > { %1174 = vpow2.f32 %v681_v0  ;;  %v686_v3 = vsel %vm582_vm2, %v1173_v1, 0.0  ;;  %v696_v13 = vpack.c.bf16 %v1173_v1, %v1173_v1 }
 0x23e   : > { %1176 = vpow2.f32 %v679_v2  ;;  %687 = vadd.xlane.f32.xlu1 %v686_v3  ;;  %842 = vmatpush.bf16.msra.mxu3 %v1056_v47 }
 0x241   : > { %v661_v4 = vpop.xlane.xlu1 %660  ;;  %v700_v5 = vld [vmem:[#allocation3 + $0x4] sm:$0xf] }
 0x242   : > { %v671_v6 = vsub.f32 %v598_v39, %v661_v4  ;;  %v727_v7 = vsel %vm706_vm3, %v700_v5, 0 }
 0x243   : > { %v1175_v8 = vpop.eup %1174  ;;  %736 = vmatpush.bf16.msra.mxu0 %v727_v7 }
 0x244   : > { %v1177_v9 = vpop.eup %1176  ;;  %v698_v10 = vpack.c.bf16 %v1175_v8, %v1175_v8  ;;  %v675_v11 = vmul.f32 1.442695, %v671_v6  ;;  %v692_v12 = vsel %vm582_vm2, %v1175_v8, 0.0 }
 0x245   : > { %693 = vadd.xlane.f32.xlu2 %v692_v12  ;;  %v689_v14 = vsel %vm582_vm2, %v1177_v9, 0.0  ;;  %v697_v21 = vpack.c.bf16 %v1177_v9, %v1177_v9 }
 0x246   : > { %1178 = vpow2.f32 %v675_v11  ;;  %1036 = vmatmul.msk.bf16.vlgmr.msra.gmra.mxu2 %vm582_vm2, %v698_v10  ;;  %690 = vadd.xlane.f32.xlu0 %v689_v14 }
 0x247   : > { %1034 = vmatmul.msk.bf16.vlgmr.msra.gmra.mxu0 %vm582_vm2, %v696_v13 }
 0x24b   : > { %v498_v15 = vpop.permute.xlu0 %497 }
 0x24c   : > { %v1179_v16 = vpop.eup %1178  ;;  %501 = vst.msk [vmem:[#allocation3 + $0x8] sm:$0xf] %vm477_vm1, %v498_v15 }
 0x24d   : > { %v683_v17 = vsel %vm582_vm2, %v1179_v16, 0.0  ;;  %v695_v18 = vpack.c.bf16 %v1179_v16, %v1179_v16 }
 0x24e   : > { %684 = vadd.xlane.f32.xlu1 %v683_v17 }
 0x24f   : > { %1033 = vmatmul.msk.bf16.vlgmr.msrb.gmra.mxu3 %vm582_vm2, %v695_v18 }
 0x253   : > { %v701_v19 = vld [vmem:[#allocation3 + $0x8] sm:$0xf] }
 0x254   : > { %v746_v20 = vsel %vm706_vm3, %v701_v19, 0 }
 0x255   : > { %755 = vmatpush.bf16.msra.mxu1 %v746_v20 }
 0x258   : > { %1035 = vmatmul.msk.bf16.vlgmr.msra.gmra.mxu1 %vm582_vm2, %v697_v21 }
 0x2b1   : > { %v688_v22 = vpop.xlane.xlu1 %687 }
 0x2b2   : > { %1180 = vrcp.f32 %v688_v22 }
 0x2b8   : > { %v694_v23 = vpop.xlane.xlu2 %693  ;;  %v1181_v24 = vpop.eup %1180 }
 0x2b9   : > { %1182 = vrcp.f32 %v694_v23  ;;  %v691_v32 = vpop.xlane.xlu0 %690 }
 0x2bf   : > { %v1183_v28 = vpop.eup %1182 }
 0x2c1   : > { %v685_v29 = vpop.xlane.xlu1 %684 }
 0x2c2   : > { %1184 = vrcp.f32 %v685_v29 }
 0x2c3   : > { %1186 = vrcp.f32 %v691_v32 }
 0x2c4   : > { %v738_v25 = vpop.f32.mrf.mxu0 }
 0x2c5   : > { %v785_v26 = vmul.f32 %v1181_v24, %v738_v25 }
 0x2c7   : > { %v789_v27 = vpack.c.bf16 %v785_v26, %v785_v26 }
 0x2c8   : > { %v1185_v36 = vpop.eup %1184 }
 0x2c9   : > { %v776_v30 = vpop.f32.mrf.mxu2  ;;  %794 = vrot.lane.b32.xlu1 %v789_v27, %s1439_s18  ;;  %v1187_v39 = vpop.eup %1186  ;;  %s1354_s18 = scalar_lea.hbm %s1353_s15, 8 }
 0x2ca   : > { %v787_v31 = vmul.f32 %v1183_v28, %v776_v30  ;;  %p1355_p1 = scmp.ne.s32.totalorder %s1353_s15, %s1354_s18  ;;  %p1360_p10 = scmp.lt.s32.totalorder %s1358_s17, %s1354_s18 }
 0x2cc   : > { %v791_v33 = vpack.c.bf16 %v787_v31, %v787_v31  ;;  %v740_v34 = vpop.f32.mrf.mxu0  ;;  %p1356_p3 = pnand %p1355_p1, %p1579_p0  ;;  %p1361_p12 = por %p1360_p10, %p1359_p9 }
 0x2ce   : > { %806 = vrot.lane.b32.xlu0 %v791_v33, %s1440_s13  ;;  %p1357_p8 = pneg %p1356_p3 }
 0x2d0   : > { %p1362_p13 = pnand %p1361_p12, %p1357_p8 }
 0x2d1   : > { %v778_v35 = vpop.f32.mrf.mxu2 }
 0x2d2   : > { %v719_v37 = vpop.f32.mrf.mxu3 }
 0x2d3   : > { %v784_v38 = vmul.f32 %v1185_v36, %v719_v37 }
 0x2d5   : > { %v788_v40 = vpack.c.bf16 %v784_v38, %v784_v38  ;;  %v757_v41 = vpop.f32.mrf.mxu1 }
 0x2d6   : > { %v786_v42 = vmul.f32 %v1187_v39, %v757_v41 }
 0x2d7   : > { %792 = vst.msk [vmem:[#allocation5] sm:$0xf] %vm477_vm1, %v788_v40 }
 0x2d8   : > { %v790_v43 = vpack.c.bf16 %v786_v42, %v786_v42 }
 0x2da   : > { %800 = vrot.lane.b32.xlu1 %v790_v43, %s1441_s14  ;;  %v721_v44 = vpop.f32.mrf.mxu3 }
 0x2dd   : > { %v759_v45 = vpop.f32.mrf.mxu1 }
 0x33b   : > { %v795_v48 = vpop.permute.xlu1 %794 }
 0x33c   : > { %798 = vst.msk [vmem:[#allocation5] sm:$0xf] %vm797_vm4, %v795_v48 }
 0x340   : > { %v807_v50 = vpop.permute.xlu0 %806 }
 0x34c   : > { %v801_v49 = vpop.permute.xlu1 %800 }
 0x34d   : > { %804 = vst.msk [vmem:[#allocation5] sm:$0xf] %vm803_vm5, %v801_v49 }
 0x34e   : > { %810 = vst.msk [vmem:[#allocation5] sm:$0xf] %vm809_vm6, %v807_v50 }
 0x355   : > { %v811_v51 = vld [vmem:[#allocation5] sm:$0xf] }
 0x356   : > { %1045 = vmatmul.msk.bf16.vlgmr.msra.gmra.mxu3 %vm425_vm0, %v811_v51 }
 0x3d9   : > { %v844_v53 = vpop.f32.mrf.mxu3 }
 0x3da   : > { %v845_v54 = vadd.f32 %v1171_v52, %v844_v53 }
 0x3dc   : > { %848 = vst.msk [vmem:[%s402_s12] sm:$0xff] %vm425_vm0, %v845_v54 }
 0x3dd   : > { %1365 = shalt.err (!%p1362_p13)
}
 0x3de   : > { %1076 = dma.vmem_to_hbm [thread:$0]  (%p1579_p0), %s864_s16, 128, %s866_s19, %s850_s30  }
 0x3e1   : > { %v846_v55 = vpop.f32.mrf.mxu3 }
 0x3e2 PF: > { %s877_s20 = sand.u32 1, %s1408_s27   ;;  %p1096_p2 = pnand %p992_p6, %p1586_p5 }
 0x3e3   : > { %s878_s11 = scalar_lea.sflag [#allocation8], %s877_s20 }
 0x3e4   : > { %p1097_p4 = pneg %p1096_p2 }
 0x3e6   : > { %1403 = dma.done.wait (%p1097_p4), %s878_s11, 128  }
 0x3e7   : > { %1405 = vsyncadd (%p1097_p4), %s878_s11, 4294967168  ;;  %s26_s10 = sadd.s32 1, %s1428_s10   ;;  %s1735_s27 = smov %s1412_s28 }
 0x3e8   : > { %p23_p7 = scmp.ge.s32.totalorder %s26_s10, 4   ;;  %s1736_s28 = smov %s1416_s29 }
 0x3e9   : > { %s1737_s29 = smov %s1584_s24  ;;  %s1738_s30 = smov %s1424_s9 }
 0x3ea   : > { %s1739_s9 = smov %s1741_s22  ;;  %25 = sbr.rel (!%p23_p7) target bundleno = 12 (0xc), region = 127 }
 0x3ef   :  { %884 = vsyncpa [#allocation7], 1 }
 0x3f0   :  { %886 = vsyncpa [#allocation7 + $0x1], 1 }
 0x3f1   :  { %887 = vsyncpa [#allocation10], 1 }
 0x3f2   :  { %888 = vsyncpa [#allocation13], 1 }
 0x3f3   :  { %889 = vsyncpa [#allocation8], 1 }
 0x3f4   :  { %891 = vsyncpa [#allocation8 + $0x1], 1 }

// kernel: tpu_custom_call.1
= control target key start
LH: loop header
LB: loop body
LE: loop exit
PB: predicated region body
PF: predicated region fallthrough
CT: control target
= control target key end

     0   :  { %s1714_s0 = inlined_call_operand.hbm [shape: bf16[2,8,32], index: 0, kind: input, shape index: {}]   ;;  %s1715_s1 = inlined_call_operand.hbm [shape: bf16[32,32], index: 1, kind: input, shape index: {}]   ;;  %s1716_s2 = inlined_call_operand.hbm [shape: bf16[32,32], index: 2, kind: input, shape index: {}]   ;;  %s1717_s3 = inlined_call_operand.hbm [shape: bf16[32,32], index: 3, kind: input, shape index: {}]   ;;  %s1718_s4 = inlined_call_operand.hbm [shape: bf16[32,32], index: 4, kind: input, shape index: {}]   ;;  %s1719_s5 = inlined_call_operand.vmem [shape: f32[1,32], index: 5, kind: input, shape index: {}]   ;;  %s1720_s6 = inlined_call_operand.vmem [shape: f32[1,32], index: 6, kind: input, shape index: {}]   ;;  %s1721_s7 = inlined_call_operand.vmem [shape: f32[1,32], index: 7, kind: input, shape index: {}]   ;;  %s1722_s8 = inlined_call_operand.hbm [shape: f32[2,8,32], index: 8, kind: output, shape index: {}]  }
   0x1   :  { %1723 = sst [smem:[#allocation20_spill]] %s1715_s1 }
   0x2   :  { %1724 = sst [smem:[#allocation21_spill]] %s1716_s2 }
   0x3   :  { %1725 = sst [smem:[#allocation22_spill]] %s1717_s3 }
   0x4   :  { %13 = vsyncpa [#allocation7], 0 }
   0x5   :  { %15 = vsyncpa [#allocation7 + $0x1], 0 }
   0x6   :  { %16 = vsyncpa [#allocation10], 0 }
   0x7   :  { %17 = vsyncpa [#allocation13], 0 }
   0x8   :  { %18 = vsyncpa [#allocation8], 0 }
   0x9   :  { %20 = vsyncpa [#allocation8 + $0x1], 0  ;;  %s1487_s27 = smov 0   ;;  %s1489_s28 = smov 0  }
   0xa   :  { %s1491_s29 = smov 0   ;;  %s1493_s30 = smov 0  }
   0xb   :  { %s1495_s9 = smov 0   ;;  %s1497_s10 = smov 0  }
   0xc LB: > { %s985_s11 = sadd.s32 4294967295, %s1428_s10   ;;  %p987_p0 = scmp.ge.s32.totalorder %s1428_s10, 1  ;;  %s1428_s10 = sphi %s1497_s10, %s26_s10   ;;  %s1424_s9 = sphi %s1495_s9, %s1739_s9   ;;  %s1420_s30 = sphi %s1493_s30, %s1738_s30   ;;  %s1416_s29 = sphi %s1491_s29, %s1737_s29   ;;  %s1412_s28 = sphi %s1489_s28, %s1736_s28   ;;  %s1408_s27 = sphi %s1487_s27, %s1735_s27  }
   0xd   : > { %p1521_p1 = scmp.eq.s32.totalorder %s985_s11, 0  ;;  %p244_p2 = scmp.lt.s32.totalorder %s1428_s10, 3 }
   0xe   : > { %s1727_s1 = sld [smem:[#allocation20_spill]]  ;;  %s1430_s17 = smov [#allocation9]  }
   0xf   : > { %p1529_p3 = pnand %p987_p0, %p244_p2  ;;  %s257_s18 = sshll.u32 %s1430_s17, 4  ;;  %s258_s18 = int_to_ptr.vmem [resolvable:$true] %s257_s18 }
  0x10   : > { %p992_p6 = scmp.ge.s32.totalorder %s1428_s10, 2  ;;  %s1730_s3 = sld [smem:[#allocation22_spill]] }
  0x11   : > { %p1078_p4 = pneg %p1529_p3  ;;  %s1431_s23 = smov 64  }
  0x12   : > { %s1432_s24 = smov 4   ;;  %s1433_s25 = smov [#allocation12]  }
  0x13   : > { %p1537_p5 = pnand %p1078_p4, %p1521_p1  ;;  %s285_s26 = sshll.u32 %s1433_s25, 4  ;;  %s286_s26 = int_to_ptr.vmem [resolvable:$true] %s285_s26 }
  0x14   : > { %s255_s15 = sshll.u32 %s1727_s1, 4  ;;  %s1731_s2 = sld [smem:[#allocation21_spill]]  ;;  %s256_s15 = int_to_ptr.hbm [resolvable:$true] %s255_s15 }
  0x15   : > { %1081 = dma.hbm_to_vmem [thread:$0]  (!%p1537_p5), %s256_s15, 256, %s258_s18, [#allocation10], %s1431_s23, %s1431_s23, %s1432_s24  }
  0x16   : > { %s283_s22 = sshll.u32 %s1730_s3, 4  ;;  %s297_s15 = sshll.u32 %s1718_s4, 4  ;;  %s284_s22 = int_to_ptr.hbm [resolvable:$true] %s283_s22  ;;  %s298_s15 = int_to_ptr.hbm [resolvable:$true] %s297_s15 }
  0x17   : > { %1087 = dma.hbm_to_vmem [thread:$0]  (!%p1537_p5), %s284_s22, 256, %s286_s26, [#allocation13], %s1431_s23, %s1431_s23, %s1432_s24  }
  0x18   : > { %s1434_s18 = smov [#allocation11]   ;;  %s1435_s13 = smov [#allocation14]  }
  0x19   : > { %s271_s25 = sshll.u32 %s1434_s18, 4  ;;  %s299_s14 = sshll.u32 %s1435_s13, 4  ;;  %s272_s25 = int_to_ptr.vmem [resolvable:$true] %s271_s25  ;;  %s300_s14 = int_to_ptr.vmem [resolvable:$true] %s299_s14 }
  0x1a   : > { %s269_s17 = sshll.u32 %s1731_s2, 4  ;;  %s38_s22 = sadd.s32 1, %s1424_s9  ;;  %s270_s17 = int_to_ptr.hbm [resolvable:$true] %s269_s17 }
  0x1b   : > { %1084 = dma.hbm_to_vmem [thread:$0]  (!%p1537_p5), %s270_s17, 256, %s272_s25, [#allocation10], %s1431_s23, %s1431_s23, %s1432_s24  }
  0x1c   : > { %1090 = dma.hbm_to_vmem [thread:$0]  (!%p1537_p5), %s298_s15, 256, %s300_s14, [#allocation13], %s1431_s23, %s1431_s23, %s1432_s24  }
  0x1d   : > { %s986_s26 = sadd.s32 4294967294, %s1428_s10   ;;  %p40_p7 = scmp.ge.s32.totalorder %s38_s22, 2 }
  0x1e   : > { %s45_s20 = sadd.s32 1, %s1416_s29  ;;  %p52_p8 = scmp.ne.s32.totalorder %s1416_s29, %s1412_s28 }
  0x1f   : > { %s1741_s22 = smov (%p40_p7, %s38_s22), 0  ;;  %p53_p9 = scmp.eq.s32.totalorder %s1428_s10, 0 }
  0x20   : > { %p58_p10 = scmp.ne.s32.totalorder %s1412_s28, %s1408_s27  ;;  %s42_s17 = ssub.s32 %s1424_s9, %s1741_s22 }
  0x21   : > { %p231_p11 = scmp.eq.s32.totalorder %s985_s11, 1  ;;  %p43_p12 = scmp.eq.s32.totalorder %s42_s17, 0 }
  0x22   : > { %p1575_p13 = por %p1521_p1, %p58_p10  ;;  %p237_p2 = scmp.eq.s32.totalorder %s986_s26, 1 }
  0x23   : > { %p1579_p0 = por %p231_p11, %p52_p8  ;;  %p54_p4 = por %p53_p9, %p52_p8 }
  0x24   : > { %s1584_s24 = scalar_select %p43_p12, %s1416_s29, %s45_s20  }
  0x25   : > { %p1586_p5 = por %p237_p2, %p58_p10  ;;  %s322_s15 = sand.u32 1, %s1416_s29  }
  0x26   : > { %s994_s11 = sshll.u32 %s1424_s9, 2  ;;  %p1103_p7 = scmp.lt.s32.totalorder %s1428_s10, 2 }
  0x27   : > { %s993_s18 = sshll.u32 %s322_s15, 2  ;;  %s330_s14 = scalar_lea.hbm %s1714_s0, %s994_s11 }
  0x28   : > { %s332_s17 = sshll.u32 %s330_s14, 4  ;;  %s326_s1 = scalar_lea.vmem [#allocation6], %s993_s18  ;;  %s333_s17 = int_to_ptr.hbm [resolvable:$true] %s332_s17 }
  0x29   : > { %s334_s2 = sshll.u32 %s326_s1, 4  ;;  %p1092_p11 = pnand %p1103_p7, %p54_p4  ;;  %s335_s2 = int_to_ptr.vmem [resolvable:$true] %s334_s2 }
  0x2a   : > { %s323_s26 = scalar_lea.sflag [#allocation7], %s322_s15  ;;  %343 = sbr.rel (%p1529_p3) target bundleno = 994 (0x3e2), region = 52 }
  0x2b   : > { %1094 = dma.hbm_to_vmem [thread:$0]  (!%p1092_p11), %s333_s17, 64, %s335_s2, %s323_s26  }
  0x2c   : > { %s1599_s20 = sand.u32 (!%p1529_p3), 1, %s1412_s28  }
  0x2d   : > { %s996_s3 = sshll.u32 (!%p1529_p3), %s1599_s20, 2  ;;  %s346_s25 = scalar_lea.sflag (!%p1529_p3), [#allocation7], %s1599_s20 }
  0x2e   : > { %s349_s11 = scalar_lea.vmem (!%p1529_p3), [#allocation6], %s996_s3 }
  0x2f   : > { %1391 = dma.done.wait (%p1575_p13), %s346_s25, 64  }
  0x30   : > { %1393 = vsyncadd (%p1575_p13), %s346_s25, 4294967232 }
  0x31   : > { %1395 = dma.done.wait (%p1521_p1), [#allocation10], 512  }
  0x32   : > { %1397 = vsyncadd (%p1521_p1), [#allocation10], 4294966784 }
  0x33   : > { %1399 = dma.done.wait (%p1521_p1), [#allocation13], 512  }
  0x34   : > { %1401 = vsyncadd (%p1521_p1), [#allocation13], 4294966784  ;;  %v1051_v0 = vld [vmem:[#allocation11 + $0x8] sm:$0xff]  ;;  %v1055_v1 = vld [vmem:[#allocation9 + $0x8] sm:$0xff]  ;;  %vm425_vm0 = vcmask 261120   ;;  %vm477_vm1 = vcmask 60416  }
  0x35   : > { %v1050_v2 = vld [vmem:[#allocation11] sm:$0xff]  ;;  %v1054_v3 = vld [vmem:[#allocation9] sm:$0xff]  ;;  %435 = vmatpush.bf16.msra.mxu0 %v1051_v0  ;;  %548 = vmatpush.bf16.msra.mxu2 %v1055_v1  ;;  %v408_v4 = vld [vmem:[%s349_s11] sm:$0xf]  ;;  %s1436_s1 = smov 120   ;;  %s1437_s2 = smov 104  }
  0x36   : > { %v517_v5 = vld [vmem:[%s349_s11] sm:$0xf]  ;;  %v1053_v6 = vld [vmem:[#allocation12 + $0x8] sm:$0xff]  ;;  %v1052_v7 = vld [vmem:[#allocation12] sm:$0xff]  ;;  %vm582_vm2 = vcmask 64512   ;;  %s1438_s16 = smov 112  }
  0x37   : > { %468 = vmatpush.bf16.msra.mxu1 %v1053_v6  ;;  %v1169_v10 = vld [vmem:[%s1719_s5] ss:$0 sm:$0xff]  ;;  %vm706_vm3 = vcmask 1043456   ;;  %s1439_s18 = smov 8   ;;  %s1440_s13 = smov 24   ;;  %vm797_vm4 = vcmask 126016  }
  0x38   : > { %v1170_v30 = vld [vmem:[%s1720_s6] ss:$0 sm:$0xff]  ;;  %s1441_s14 = smov 16   ;;  %vm803_vm5 = vcmask 191616   ;;  %vm809_vm6 = vcmask 257216   ;;  %s1047_s17 = sshll.u32 %s1420_s30, 3 }
  0x39   : > { %436 = vmatpush.bf16.msra.mxu0 %v1050_v2  ;;  %549 = vmatpush.bf16.msra.mxu2 %v1054_v3  ;;  %s1001_s26 = sshll.u32 %s1599_s20, 3  ;;  %s850_s30 = scalar_lea.sflag [#allocation8], %s1599_s20 }
  0x3a   : > { %s402_s12 = scalar_lea.vmem [#allocation15], %s1001_s26 }
  0x3b   : > { %469 = vmatpush.bf16.msra.mxu1 %v1052_v7 }
  0x3c   : > { %1010 = vmatmul.msk.bf16.vlgmr.msra.gmra.mxu0 %vm425_vm0, %v408_v4  ;;  %1028 = vmatmul.msk.bf16.vlgmr.msra.gmra.mxu2 %vm425_vm0, %v517_v5 }
  0x3e   : > { %1019 = vmatmul.msk.bf16.vlgmr.msra.gmra.mxu1 %vm425_vm0, %v408_v4 }
  0xb9   : > { %v438_v8 = vpop.f32.mrf.mxu0 }
  0xba   : > { %v475_v9 = vpack.c.bf16 %v438_v8, %v438_v8 }
  0xbb   : > { %v471_v28 = vpop.f32.mrf.mxu1 }
  0xbc   : > { %478 = vst.msk [vmem:[#allocation2] sm:$0xf] %vm477_vm1, %v475_v9  ;;  %481 = vrot.lane.b32.xlu1 %v475_v9, %s1436_s1  ;;  %502 = vrot.lane.b32.xlu0 %v475_v9, %s1437_s2  ;;  %v472_v31 = vadd.f32 %v1170_v30, %v471_v28 }
  0xbe   : > { %v476_v32 = vpack.c.bf16 %v472_v31, %v472_v31 }
  0xbf   : > { %v551_v11 = vpop.f32.mrf.mxu2 }
  0xc0   : > { %v552_v12 = vadd.f32 %v1169_v10, %v551_v11  ;;  %479 = vst.msk [vmem:[#allocation3] sm:$0xf] %vm477_vm1, %v476_v32 }
  0xc1   : > { %v440_v13 = vpop.f32.mrf.mxu0 }
  0xc2   : > { %v555_v14 = vpack.c.bf16 %v552_v12, %v552_v12 }
  0xc3   : > { %v578_v15 = vld [vmem:[#allocation2] sm:$0xf]  ;;  %v473_v37 = vpop.f32.mrf.mxu1 }
  0xc4   : > { %557 = vst.msk [vmem:[#allocation4] sm:$0xf] %vm477_vm1, %v555_v14  ;;  %559 = vrot.lane.b32.xlu2 %v555_v14, %s1436_s1  ;;  %492 = vrot.lane.b32.xlu1 %v475_v9, %s1438_s16  ;;  %v587_v16 = vsel %vm582_vm2, %v578_v15, 0 }
  0xc5   : > { %569 = vrot.lane.b32.xlu0 %v555_v14, %s1437_s2  ;;  %596 = vmatpush.bf16.xpose.msra.mxu3 %v587_v16 }
  0xc7   : > { %v553_v17 = vpop.f32.mrf.mxu2  ;;  %v699_v41 = vld [vmem:[#allocation3] sm:$0xf] }
  0xc8   : > { %v708_v42 = vsel %vm706_vm3, %v699_v41, 0 }
  0xcb   : > { %v574_v18 = vld [vmem:[#allocation4] sm:$0xf] }
  0xcc   : > { %564 = vrot.lane.b32.xlu2 %v555_v14, %s1438_s16  ;;  %1029 = vmatmul.msk.bf16.vlgmr.msra.gmra.mxu3 %vm582_vm2, %v574_v18 }
  0xcd   : > { %507 = vrot.lane.b32.xlu1 %v476_v32, %s1437_s2  ;;  %717 = vmatpush.bf16.msrb.mxu3 %v708_v42 }
 0x11e   : > { %v560_v19 = vpop.permute.xlu2 %559 }
 0x11f   : > { %563 = vst.msk [vmem:[#allocation4 + $0x4] sm:$0xf] %vm477_vm1, %v560_v19 }
 0x126   : > { %v565_v20 = vpop.permute.xlu2 %564  ;;  %v575_v33 = vld [vmem:[#allocation4 + $0x4] sm:$0xf] }
 0x127   : > { %568 = vst.msk [vmem:[#allocation4 + $0x8] sm:$0xf] %vm477_vm1, %v565_v20 }
 0x12e   : > { %v482_v21 = vpop.permute.xlu1 %481  ;;  %v503_v22 = vpop.permute.xlu0 %502  ;;  %v576_v38 = vld [vmem:[#allocation4 + $0x8] sm:$0xf] }
 0x12f   : > { %485 = vst.msk [vmem:[#allocation2 + $0x4] sm:$0xf] %vm477_vm1, %v482_v21 }
 0x130   : > { %506 = vst.msk [vmem:[#allocation2 + $0xc] sm:$0xf] %vm477_vm1, %v503_v22 }
 0x136   : > { %v493_v23 = vpop.permute.xlu1 %492  ;;  %v579_v24 = vld [vmem:[#allocation2 + $0x4] sm:$0xf] }
 0x137   : > { %496 = vst.msk [vmem:[#allocation2 + $0x8] sm:$0xf] %vm477_vm1, %v493_v23  ;;  %v570_v25 = vpop.permute.xlu0 %569  ;;  %v606_v26 = vsel %vm582_vm2, %v579_v24, 0  ;;  %v581_v27 = vld [vmem:[#allocation2 + $0xc] sm:$0xf] }
 0x138   : > { %573 = vst.msk [vmem:[#allocation4 + $0xc] sm:$0xf] %vm477_vm1, %v570_v25  ;;  %615 = vmatpush.bf16.xpose.msrb.mxu0 %v606_v26  ;;  %v644_v29 = vsel %vm582_vm2, %v581_v27, 0 }
 0x139   : > { %653 = vmatpush.bf16.xpose.msrb.mxu2 %v644_v29 }
 0x13e   : > { %v580_v34 = vld [vmem:[#allocation2 + $0x8] sm:$0xf] }
 0x13f   : > { %1030 = vmatmul.msk.bf16.vlgmr.msrb.gmra.mxu0 %vm582_vm2, %v575_v33  ;;  %v577_v35 = vld [vmem:[#allocation4 + $0xc] sm:$0xf]  ;;  %v625_v36 = vsel %vm582_vm2, %v580_v34, 0  ;;  %v508_v43 = vpop.permute.xlu1 %507 }
 0x140   : > { %1032 = vmatmul.msk.bf16.vlgmr.msrb.gmra.mxu2 %vm582_vm2, %v577_v35  ;;  %634 = vmatpush.bf16.xpose.msrb.mxu1 %v625_v36  ;;  %511 = vst.msk [vmem:[#allocation3 + $0xc] sm:$0xf] %vm477_vm1, %v508_v43 }
 0x147   : > { %1031 = vmatmul.msk.bf16.vlgmr.msrb.gmra.mxu1 %vm582_vm2, %v576_v38  ;;  %v702_v54 = vld [vmem:[#allocation3 + $0xc] sm:$0xf] }
 0x148   : > { %v765_v55 = vsel %vm706_vm3, %v702_v54, 0 }
 0x149   : > { %774 = vmatpush.bf16.msra.mxu2 %v765_v55 }
 0x14f   : > { %v598_v39 = vpop.f32.mrf.mxu3 }
 0x150   : > { %v659_v53 = vsel %vm582_vm2, %v598_v39, -inf }
 0x157   : > { %v600_v40 = vpop.f32.mrf.mxu3 }
 0x1bc   : > { %v617_v44 = vpop.f32.mrf.mxu0 }
 0x1bd   : > { %v662_v45 = vsel %vm582_vm2, %v617_v44, -inf }
 0x1be   : > { %663 = vmax.xlane.f32.xlu2 %v662_v45 }
 0x1c3   : > { %v655_v46 = vpop.f32.mrf.mxu2 }
 0x1c4   : > { %v636_v47 = vpop.f32.mrf.mxu1  ;;  %v668_v48 = vsel %vm582_vm2, %v655_v46, -inf  ;;  %v619_v49 = vpop.f32.mrf.mxu0 }
 0x1c5   : > { %669 = vmax.xlane.f32.xlu0 %v668_v48  ;;  %v665_v50 = vsel %vm582_vm2, %v636_v47, -inf }
 0x1c6   : > { %666 = vmax.xlane.f32.xlu1 %v665_v50 }
 0x1cb   : > { %v657_v51 = vpop.f32.mrf.mxu2 }
 0x1cc   : > { %v638_v52 = vpop.f32.mrf.mxu1 }
 0x1cd   : > { %v1171_v52 = vld [vmem:[%s1721_s7] ss:$0 sm:$0xff] }
 0x1ce   : > { %660 = vmax.xlane.f32.xlu1 %v659_v53 }
 0x1d6   : > { %487 = vrot.lane.b32.xlu2 %v476_v32, %s1436_s1  ;;  %s861_s1 = scalar_lea.hbm %s1722_s8, %s1047_s17  ;;  %s1358_s17 = scalar_lea.hbm %s1722_s8, 16 }
 0x1d7   : > { %s865_s19 = sshll.u32 %s861_s1, 4  ;;  %s866_s19 = int_to_ptr.hbm [resolvable:$true] %s865_s19 }
 0x1d8   : > { %s1352_s15 = sshra.s32 %s866_s19, 4  ;;  %s1353_s15 = int_to_ptr.hbm [resolvable:$true] %s1352_s15 }
 0x1d9   : > { %497 = vrot.lane.b32.xlu0 %v476_v32, %s1438_s16  ;;  %s863_s16 = sshll.u32 %s402_s12, 4  ;;  %p1359_p9 = scmp.lt.s32.totalorder %s1353_s15, %s1722_s8  ;;  %s864_s16 = int_to_ptr.vmem [resolvable:$true] %s863_s16 }
 0x231   : > { %v664_v56 = vpop.xlane.xlu2 %663 }
 0x232   : > { %v672_v57 = vsub.f32 %v617_v44, %v664_v56 }
 0x234   : > { %v677_v58 = vmul.f32 1.442695, %v672_v57 }
 0x236   : > { %1172 = vpow2.f32 %v677_v58 }
 0x238   : > { %v670_v59 = vpop.xlane.xlu0 %669 }
 0x239   : > { %v674_v60 = vsub.f32 %v655_v46, %v670_v59  ;;  %v667_v61 = vpop.xlane.xlu1 %666  ;;  %v488_v62 = vpop.permute.xlu2 %487  ;;  %v1057_v46 = vld [vmem:[#allocation14 + $0x8] sm:$0xff] }
 0x23a   : > { %v673_v63 = vsub.f32 %v636_v47, %v667_v61  ;;  %491 = vst.msk [vmem:[#allocation3 + $0x4] sm:$0xf] %vm477_vm1, %v488_v62  ;;  %841 = vmatpush.bf16.msra.mxu3 %v1057_v46  ;;  %v1056_v47 = vld [vmem:[#allocation14] sm:$0xff] }
 0x23b   : > { %v681_v0 = vmul.f32 1.442695, %v674_v60 }
 0x23c   : > { %v1173_v1 = vpop.eup %1172  ;;  %v679_v2 = vmul.f32 1.442695, %v673_v63 }
 0x23d   : > { %1174 = vpow2.f32 %v681_v0  ;;  %v686_v3 = vsel %vm582_vm2, %v1173_v1, 0.0  ;;  %v696_v13 = vpack.c.bf16 %v1173_v1, %v1173_v1 }
 0x23e   : > { %1176 = vpow2.f32 %v679_v2  ;;  %687 = vadd.xlane.f32.xlu1 %v686_v3  ;;  %842 = vmatpush.bf16.msra.mxu3 %v1056_v47 }
 0x241   : > { %v661_v4 = vpop.xlane.xlu1 %660  ;;  %v700_v5 = vld [vmem:[#allocation3 + $0x4] sm:$0xf] }
 0x242   : > { %v671_v6 = vsub.f32 %v598_v39, %v661_v4  ;;  %v727_v7 = vsel %vm706_vm3, %v700_v5, 0 }
 0x243   : > { %v1175_v8 = vpop.eup %1174  ;;  %736 = vmatpush.bf16.msra.mxu0 %v727_v7 }
 0x244   : > { %v1177_v9 = vpop.eup %1176  ;;  %v698_v10 = vpack.c.bf16 %v1175_v8, %v1175_v8  ;;  %v675_v11 = vmul.f32 1.442695, %v671_v6  ;;  %v692_v12 = vsel %vm582_vm2, %v1175_v8, 0.0 }
 0x245   : > { %693 = vadd.xlane.f32.xlu2 %v692_v12  ;;  %v689_v14 = vsel %vm582_vm2, %v1177_v9, 0.0  ;;  %v697_v21 = vpack.c.bf16 %v1177_v9, %v1177_v9 }
 0x246   : > { %1178 = vpow2.f32 %v675_v11  ;;  %1036 = vmatmul.msk.bf16.vlgmr.msra.gmra.mxu2 %vm582_vm2, %v698_v10  ;;  %690 = vadd.xlane.f32.xlu0 %v689_v14 }
 0x247   : > { %1034 = vmatmul.msk.bf16.vlgmr.msra.gmra.mxu0 %vm582_vm2, %v696_v13 }
 0x24b   : > { %v498_v15 = vpop.permute.xlu0 %497 }
 0x24c   : > { %v1179_v16 = vpop.eup %1178  ;;  %501 = vst.msk [vmem:[#allocation3 + $0x8] sm:$0xf] %vm477_vm1, %v498_v15 }
 0x24d   : > { %v683_v17 = vsel %vm582_vm2, %v1179_v16, 0.0  ;;  %v695_v18 = vpack.c.bf16 %v1179_v16, %v1179_v16 }
 0x24e   : > { %684 = vadd.xlane.f32.xlu1 %v683_v17 }
 0x24f   : > { %1033 = vmatmul.msk.bf16.vlgmr.msrb.gmra.mxu3 %vm582_vm2, %v695_v18 }
 0x253   : > { %v701_v19 = vld [vmem:[#allocation3 + $0x8] sm:$0xf] }
 0x254   : > { %v746_v20 = vsel %vm706_vm3, %v701_v19, 0 }
 0x255   : > { %755 = vmatpush.bf16.msra.mxu1 %v746_v20 }
 0x258   : > { %1035 = vmatmul.msk.bf16.vlgmr.msra.gmra.mxu1 %vm582_vm2, %v697_v21 }
 0x2b1   : > { %v688_v22 = vpop.xlane.xlu1 %687 }
 0x2b2   : > { %1180 = vrcp.f32 %v688_v22 }
 0x2b8   : > { %v694_v23 = vpop.xlane.xlu2 %693  ;;  %v1181_v24 = vpop.eup %1180 }
 0x2b9   : > { %1182 = vrcp.f32 %v694_v23  ;;  %v691_v32 = vpop.xlane.xlu0 %690 }
 0x2bf   : > { %v1183_v28 = vpop.eup %1182 }
 0x2c1   : > { %v685_v29 = vpop.xlane.xlu1 %684 }
 0x2c2   : > { %1184 = vrcp.f32 %v685_v29 }
 0x2c3   : > { %1186 = vrcp.f32 %v691_v32 }
 0x2c4   : > { %v738_v25 = vpop.f32.mrf.mxu0 }
 0x2c5   : > { %v785_v26 = vmul.f32 %v1181_v24, %v738_v25 }
 0x2c7   : > { %v789_v27 = vpack.c.bf16 %v785_v26, %v785_v26 }
 0x2c8   : > { %v1185_v36 = vpop.eup %1184 }
 0x2c9   : > { %v776_v30 = vpop.f32.mrf.mxu2  ;;  %794 = vrot.lane.b32.xlu1 %v789_v27, %s1439_s18  ;;  %v1187_v39 = vpop.eup %1186  ;;  %s1354_s18 = scalar_lea.hbm %s1353_s15, 8 }
 0x2ca   : > { %v787_v31 = vmul.f32 %v1183_v28, %v776_v30  ;;  %p1355_p1 = scmp.ne.s32.totalorder %s1353_s15, %s1354_s18  ;;  %p1360_p10 = scmp.lt.s32.totalorder %s1358_s17, %s1354_s18 }
 0x2cc   : > { %v791_v33 = vpack.c.bf16 %v787_v31, %v787_v31  ;;  %v740_v34 = vpop.f32.mrf.mxu0  ;;  %p1356_p3 = pnand %p1355_p1, %p1579_p0  ;;  %p1361_p12 = por %p1360_p10, %p1359_p9 }
 0x2ce   : > { %806 = vrot.lane.b32.xlu0 %v791_v33, %s1440_s13  ;;  %p1357_p8 = pneg %p1356_p3 }
 0x2d0   : > { %p1362_p13 = pnand %p1361_p12, %p1357_p8 }
 0x2d1   : > { %v778_v35 = vpop.f32.mrf.mxu2 }
 0x2d2   : > { %v719_v37 = vpop.f32.mrf.mxu3 }
 0x2d3   : > { %v784_v38 = vmul.f32 %v1185_v36, %v719_v37 }
 0x2d5   : > { %v788_v40 = vpack.c.bf16 %v784_v38, %v784_v38  ;;  %v757_v41 = vpop.f32.mrf.mxu1 }
 0x2d6   : > { %v786_v42 = vmul.f32 %v1187_v39, %v757_v41 }
 0x2d7   : > { %792 = vst.msk [vmem:[#allocation5] sm:$0xf] %vm477_vm1, %v788_v40 }
 0x2d8   : > { %v790_v43 = vpack.c.bf16 %v786_v42, %v786_v42 }
 0x2da   : > { %800 = vrot.lane.b32.xlu1 %v790_v43, %s1441_s14  ;;  %v721_v44 = vpop.f32.mrf.mxu3 }
 0x2dd   : > { %v759_v45 = vpop.f32.mrf.mxu1 }
 0x33b   : > { %v795_v48 = vpop.permute.xlu1 %794 }
 0x33c   : > { %798 = vst.msk [vmem:[#allocation5] sm:$0xf] %vm797_vm4, %v795_v48 }
 0x340   : > { %v807_v50 = vpop.permute.xlu0 %806 }
 0x34c   : > { %v801_v49 = vpop.permute.xlu1 %800 }
 0x34d   : > { %804 = vst.msk [vmem:[#allocation5] sm:$0xf] %vm803_vm5, %v801_v49 }
 0x34e   : > { %810 = vst.msk [vmem:[#allocation5] sm:$0xf] %vm809_vm6, %v807_v50 }
 0x355   : > { %v811_v51 = vld [vmem:[#allocation5] sm:$0xf] }
 0x356   : > { %1045 = vmatmul.msk.bf16.vlgmr.msra.gmra.mxu3 %vm425_vm0, %v811_v51 }
 0x3d9   : > { %v844_v53 = vpop.f32.mrf.mxu3 }
 0x3da   : > { %v845_v54 = vadd.f32 %v1171_v52, %v844_v53 }
 0x3dc   : > { %848 = vst.msk [vmem:[%s402_s12] sm:$0xff] %vm425_vm0, %v845_v54 }
 0x3dd   : > { %1365 = shalt.err (!%p1362_p13)
}
 0x3de   : > { %1076 = dma.vmem_to_hbm [thread:$0]  (%p1579_p0), %s864_s16, 128, %s866_s19, %s850_s30  }
 0x3e1   : > { %v846_v55 = vpop.f32.mrf.mxu3 }
 0x3e2 PF: > { %s877_s20 = sand.u32 1, %s1408_s27   ;;  %p1096_p2 = pnand %p992_p6, %p1586_p5 }
 0x3e3   : > { %s878_s11 = scalar_lea.sflag [#allocation8], %s877_s20 }
 0x3e4   : > { %p1097_p4 = pneg %p1096_p2 }
 0x3e6   : > { %1403 = dma.done.wait (%p1097_p4), %s878_s11, 128  }
 0x3e7   : > { %1405 = vsyncadd (%p1097_p4), %s878_s11, 4294967168  ;;  %s26_s10 = sadd.s32 1, %s1428_s10   ;;  %s1735_s27 = smov %s1412_s28 }
 0x3e8   : > { %p23_p7 = scmp.ge.s32.totalorder %s26_s10, 4   ;;  %s1736_s28 = smov %s1416_s29 }
 0x3e9   : > { %s1737_s29 = smov %s1584_s24  ;;  %s1738_s30 = smov %s1424_s9 }
 0x3ea   : > { %s1739_s9 = smov %s1741_s22  ;;  %25 = sbr.rel (!%p23_p7) target bundleno = 12 (0xc), region = 127 }
 0x3ef   :  { %884 = vsyncpa [#allocation7], 1 }
 0x3f0   :  { %886 = vsyncpa [#allocation7 + $0x1], 1 }
 0x3f1   :  { %887 = vsyncpa [#allocation10], 1 }
 0x3f2   :  { %888 = vsyncpa [#allocation13], 1 }
 0x3f3   :  { %889 = vsyncpa [#allocation8], 1 }
 0x3f4   :  { %891 = vsyncpa [#allocation8 + $0x1], 1 }

</bundles_post_ra>
